<compile_context>
chip_gen: v7x
topology: tpu7x:2x2x1
jax: 0.10.0
libtpu: 0.0.40
codegen_flags: <defaults>
</compile_context>

<pallas_src>
import functools

import jax
import jax.numpy as jnp
from jax import lax
from jax.experimental import pallas as pl
from jax.experimental.pallas import tpu as pltpu


LANE = 128         # lane width: feature-dim padding target (lane-dense stores)
NEG_BIG = -1e30    # bias for padded logit lanes -> exp() underflows to 0


def _round_up(x, m):
    return ((x + m - 1) // m) * m


def rnn_timeblock_kernel(x_ref, h0_ref, wx_ref, wh_ref, b_ref, out_ref, hn_ref,
                         h_sc, *, seq_len, time_tile, unroll, mask_tail):
    """One (batch_tile, time_block) grid point of the fused RNN recurrence.

    x_ref  : (Tt, TB, I)  bf16  time-block of inputs (streamed, double-buffered)
    h0_ref : (TB, Hp)     bf16  initial hidden (resident per batch tile)
    wx_ref : (I,  Hp+Op)  bf16  input rows of fused [Wh^T | Wo^T]   (resident)
    wh_ref : (Hp, Hp+Op)  bf16  hidden rows of fused [Wh^T | Wo^T]  (resident)
    b_ref  : (1,  Hp+Op)  f32   fused bias (padded logit lanes = -1e30)
    out_ref: (Tt, TB, Op) f32   per-step log-softmax (lane-dense)
    hn_ref : (TB, Hp)     f32   hidden after the last real step (written once)
    h_sc   : (TB, Hp)     bf16  VMEM scratch: hidden carried across time blocks
    """
    tblk = pl.program_id(1)
    Hp = h_sc.shape[1]

    @pl.when(tblk == 0)
    def _():
        h_sc[...] = h0_ref[...]

    # Hoist the VMEM-resident operands out of the step loop (loaded once).
    wx = wx_ref[...]
    whh = wh_ref[...]
    bias = b_ref[...]

    def step(i, h):
        x_i = x_ref[i]                                      # (TB, I) bf16
        # combined @ [Wh^T | Wo^T]  ==  x @ Wx + h @ Whh : bf16 operands,
        # f32 accumulation, one wide MXU result per step.
        z = (jnp.dot(x_i, wx, preferred_element_type=jnp.float32)
             + jnp.dot(h, whh, preferred_element_type=jnp.float32)
             + bias)                                        # (TB, Hp+Op) f32

        new_h = z[:, :Hp].astype(h.dtype)                   # padded lanes stay 0
        logits = z[:, Hp:]                                   # padded lanes ~ -1e30

        # Numerically stable log-softmax over the feature (lane) axis, all f32.
        m = jnp.max(logits, axis=1, keepdims=True)
        s = logits - m
        lse = jnp.log(jnp.sum(jnp.exp(s), axis=1, keepdims=True))
        out_ref[i] = (s - lse).astype(out_ref.dtype)

        if mask_tail:
            # Steps beyond the true sequence length (time padding at the very
            # end) must not advance the hidden state.
            g = tblk * time_tile + i
            new_h = jnp.where(g < seq_len, new_h, h)
        return new_h

    h_final = lax.fori_loop(0, time_tile, step, h_sc[...], unroll=unroll)

    # One hidden store per time block (not per step).
    h_sc[...] = h_final

    @pl.when(tblk == pl.num_programs(1) - 1)
    def _():
        hn_ref[...] = h_final.astype(hn_ref.dtype)


def rnn_forward_sequence(x_seq, h0, wh, bh, wo, bo, *, time_tile=16,
                         batch_tile=None):
    """Run the whole recurrence in one pallas_call.

    x_seq: (T, B, I) f32     h0: (B, H) f32
    wh:    (H, I+H)  f32     bh: (H,)   f32     (PyTorch nn.Linear layout)
    wo:    (O, I+H)  f32     bo: (O,)   f32

    Returns (log_softmax outputs (T, B, O) f32, final hidden (B, H) f32).
    """
    T, B, I = x_seq.shape
    H = h0.shape[1]
    O = wo.shape[0]
    assert wh.shape == (H, I + H) and wo.shape == (O, I + H)
    assert bh.shape == (H,) and bo.shape == (O,)

    Hp = _round_up(max(H, LANE), LANE)       # lane-dense hidden slab
    Op = _round_up(max(O, LANE), LANE)       # lane-dense logit slab
    Np = Hp + Op

    # Batch tiling: >= 16 rows (bf16 sublane tile), <= 128 (MXU LHS height
    # saturates at 128 on v5e), and >= 2 tiles whenever the batch allows so
    # both v7x TensorCores get work on the "parallel" axis.
    if batch_tile is None:
        TB = min(128, _round_up(max(B, 16), 16))
        if B > 16:
            TB = min(TB, _round_up(-(-B // 2), 16))
    else:
        TB = batch_tile
    Bp = _round_up(max(B, TB), TB)

    # Time blocking (recurrence stays sequential; Tt steps per grid step).
    Tt = max(1, min(time_tile, T))
    Tp = _round_up(T, Tt)
    n_tblk = Tp // Tt
    mask_tail = Tp != T
    unroll = min(Tt, 8)

    # ---- one-time (per call, NOT per step) weight/bias packing ----
    wh_t = wh.T.astype(jnp.float32)          # (I+H, H)
    wo_t = wo.T.astype(jnp.float32)          # (I+H, O)

    wx = jnp.zeros((I, Np), jnp.float32)
    wx = wx.at[:, :H].set(wh_t[:I]).at[:, Hp:Hp + O].set(wo_t[:I])
    whh = jnp.zeros((Hp, Np), jnp.float32)
    whh = whh.at[:H, :H].set(wh_t[I:]).at[:H, Hp:Hp + O].set(wo_t[I:])

    bias = jnp.zeros((1, Np), jnp.float32)
    bias = bias.at[0, :H].set(bh)
    bias = bias.at[0, Hp:Hp + O].set(bo)
    bias = bias.at[0, Hp + O:].set(jnp.float32(NEG_BIG))   # kill padded logits

    wx_bf = wx.astype(jnp.bfloat16)
    whh_bf = whh.astype(jnp.bfloat16)

    x_pad = jnp.zeros((Tp, Bp, I), jnp.bfloat16)
    x_pad = x_pad.at[:T, :B, :].set(x_seq.astype(jnp.bfloat16))
    h0_pad = jnp.zeros((Bp, Hp), jnp.bfloat16).at[:B, :H].set(
        h0.astype(jnp.bfloat16))

    grid = (Bp // TB, n_tblk)

    # ---- explicit VMEM budget (double-buffered blocks + resident weights),
    # with headroom so the same tiling stays safe on v7x's 64 MiB VMEM.
    footprint = 2 * (Tt * TB * I * 2          # x block
                     + Tt * TB * Op * 4       # out block
                     + TB * Hp * 2            # h0 block
                     + TB * Hp * 4            # hn block
                     + I * Np * 2 + Hp * Np * 2 + Np * 4)   # weights + bias
    footprint += TB * Hp * 2                  # carry scratch
    vmem_limit = int(min(64 * 1024 * 1024, max(32 * 1024 * 1024, 2 * footprint)))

    kernel = functools.partial(rnn_timeblock_kernel, seq_len=T, time_tile=Tt,
                               unroll=unroll, mask_tail=mask_tail)

    out_pad, hn_pad = pl.pallas_call(
        kernel,
        out_shape=(
            jax.ShapeDtypeStruct((Tp, Bp, Op), jnp.float32),
            jax.ShapeDtypeStruct((Bp, Hp), jnp.float32),
        ),
        grid_spec=pltpu.PrefetchScalarGridSpec(
            num_scalar_prefetch=0,
            grid=grid,
            in_specs=[
                # streamed time-block of inputs
                pl.BlockSpec((Tt, TB, I), lambda b, t: (t, b, 0)),
                # initial hidden: resident per batch tile
                pl.BlockSpec((TB, Hp), lambda b, t: (b, 0)),
                # fused weights / bias: constant index -> VMEM-resident
                pl.BlockSpec((I, Np), lambda b, t: (0, 0)),
                pl.BlockSpec((Hp, Np), lambda b, t: (0, 0)),
                pl.BlockSpec((1, Np), lambda b, t: (0, 0)),
            ],
            out_specs=(
                pl.BlockSpec((Tt, TB, Op), lambda b, t: (t, b, 0)),
                pl.BlockSpec((TB, Hp), lambda b, t: (b, 0)),
            ),
            scratch_shapes=[pltpu.VMEM((TB, Hp), jnp.bfloat16)],
        ),
        compiler_params=pltpu.CompilerParams(
            # batch tiles are independent (v7x: split across both TensorCores);
            # the time axis is a true recurrence -> "arbitrary" and innermost.
            dimension_semantics=("parallel", "arbitrary"),
            vmem_limit_bytes=vmem_limit,
        ),
    )(x_pad, h0_pad, wx_bf, whh_bf, bias)

    # Consumers that tolerate the lane-padded slab should read out_pad/hn_pad
    # directly; the slice is kept so shapes match the PyTorch module exactly.
    return out_pad[:T, :B, :O], hn_pad[:B, :H]


def rnn_forward(inp, hidden, wh, bh, wo, bo):
    """Single-step forward, matching the PyTorch module's forward() signature."""
    out_seq, new_h = rnn_forward_sequence(inp[None], hidden, wh, bh, wo, bo,
                                          time_tile=1)
    return out_seq[0], new_h


def init_linear_params(key, in_features, out_features):
    """Deterministic init mirroring nn.Linear default (uniform +-1/sqrt(fan_in))."""
    kw, kb = jax.random.split(key)
    bound = 1.0 / jnp.sqrt(in_features)
    w = jax.random.uniform(kw, (out_features, in_features), jnp.float32, -bound, bound)
    b = jax.random.uniform(kb, (out_features,), jnp.float32, -bound, bound)
    return w, b


def _ref_sequence_bf16(x_seq, h0, wh, bh, wo, bo):
    """Pure-JAX reference: bf16 matmul operands + bf16 hidden carry, f32 accum."""
    h = h0.astype(jnp.bfloat16)
    wh_bf = wh.T.astype(jnp.bfloat16)
    wo_bf = wo.T.astype(jnp.bfloat16)
    outs = []
    for t in range(x_seq.shape[0]):
        comb = jnp.concatenate([x_seq[t].astype(jnp.bfloat16), h], axis=1)
        new_h = jnp.dot(comb, wh_bf, preferred_element_type=jnp.float32) + bh
        logits = jnp.dot(comb, wo_bf, preferred_element_type=jnp.float32) + bo
        outs.append(jax.nn.log_softmax(logits, axis=1))
        h = new_h.astype(jnp.bfloat16)
    return jnp.stack(outs, axis=0), h.astype(jnp.float32)


def _ref_sequence_f32(x_seq, h0, wh, bh, wo, bo):
    """Pure-JAX reference of the module's forward in full f32."""
    h = h0
    outs = []
    for t in range(x_seq.shape[0]):
        comb = jnp.concatenate([x_seq[t], h], axis=1)
        new_h = jnp.dot(comb, wh.T) + bh
        logits = jnp.dot(comb, wo.T) + bo
        outs.append(jax.nn.log_softmax(logits, axis=1))
        h = new_h
    return jnp.stack(outs, axis=0), h


if __name__ == "__main__":
    # Small shapes consistent with the tutorial module's forward.
    seq_len = 20
    batch = 24
    input_size = 16
    hidden_size = 32
    output_size = 8

    key = jax.random.PRNGKey(0)
    k_x, k_i2h, k_i2o = jax.random.split(key, 3)

    x_seq = jax.random.normal(k_x, (seq_len, batch, input_size), jnp.float32)
    h0 = jnp.zeros((batch, hidden_size), jnp.float32)   # initHidden (batched)

    wh, bh = init_linear_params(k_i2h, input_size + hidden_size, hidden_size)
    wo, bo = init_linear_params(k_i2o, input_size + hidden_size, output_size)

    # time_tile=8 -> 3 time blocks (the last one has a masked padded tail);
    # batch=24 -> two 16-row batch tiles (exercises the parallel / v7x axis).
    run = jax.jit(functools.partial(rnn_forward_sequence, time_tile=8))
    out, h_final = run(x_seq, h0, wh, bh, wo, bo)
    jax.block_until_ready((out, h_final))

    # Tight check vs. the matched-precision reference (bf16 operands + carry).
    ref_out, ref_h = _ref_sequence_bf16(x_seq, h0, wh, bh, wo, bo)
    assert jnp.allclose(out, ref_out, atol=5e-3, rtol=5e-3), "output mismatch"
    assert jnp.allclose(h_final, ref_h, atol=5e-3, rtol=5e-3), "hidden mismatch"

    # Loose sanity check against the full-f32 module math.
    ref_out32, ref_h32 = _ref_sequence_f32(x_seq, h0, wh, bh, wo, bo)
    assert jnp.allclose(out, ref_out32, atol=2e-1), "f32 output drift"
    assert jnp.allclose(h_final, ref_h32, atol=2e-1), "f32 hidden drift"

    # Single-step wrapper (exact module forward signature) sanity check.
    out1, h1 = rnn_forward(x_seq[0], h0, wh, bh, wo, bo)
    jax.block_until_ready((out1, h1))
    ref_out1, ref_h1 = _ref_sequence_bf16(x_seq[:1], h0, wh, bh, wo, bo)
    assert jnp.allclose(out1, ref_out1[0], atol=5e-3, rtol=5e-3)
    assert jnp.allclose(h1, ref_h1, atol=5e-3, rtol=5e-3)

    print("KERNEL_OK")
</pallas_src>

<mosaic_0001>
module attributes {stable_mosaic.version = 11 : i64} {
  func.func @rnn_timeblock_kernel(%arg0: i32, %arg1: i32, %arg2: memref<8x16x16xbf16, #tpu.memory_space<vmem>>, %arg3: memref<16x128xbf16, #tpu.memory_space<vmem>>, %arg4: memref<16x256xbf16, #tpu.memory_space<vmem>>, %arg5: memref<128x256xbf16, #tpu.memory_space<vmem>>, %arg6: memref<1x256xf32, #tpu.memory_space<vmem>>, %arg7: memref<8x16x128xf32, #tpu.memory_space<vmem>>, %arg8: memref<16x128xf32, #tpu.memory_space<vmem>>, %arg9: memref<16x128xbf16, #tpu.memory_space<vmem>>) attributes {dimension_semantics = [#tpu.dimension_semantics<parallel>, #tpu.dimension_semantics<arbitrary>], iteration_bounds = array<i64: 2, 3>, scalar_prefetch = 0 : i64, scratch_operands = 1 : i64, tpu.core_type = #tpu.core_type<tc>, window_params = [{transform_indices = @transform_0, window_bounds = array<i64: 8, 16, 16>}, {transform_indices = @transform_1, window_bounds = array<i64: 16, 128>}, {pipeline_mode = #tpu.pipeline_mode<synchronous>, transform_indices = @transform_2, window_bounds = array<i64: 16, 256>}, {pipeline_mode = #tpu.pipeline_mode<synchronous>, transform_indices = @transform_3, window_bounds = array<i64: 128, 256>}, {pipeline_mode = #tpu.pipeline_mode<synchronous>, transform_indices = @transform_4, window_bounds = array<i64: 1, 256>}, {transform_indices = @transform_5, window_bounds = array<i64: 8, 16, 128>}, {transform_indices = @transform_6, window_bounds = array<i64: 16, 128>}]} {
    %c0_i32 = arith.constant 0 : i32
    %0 = arith.cmpi eq, %arg1, %c0_i32 : i32
    %1 = arith.extui %0 : i1 to i32
    %c0_i32_0 = arith.constant 0 : i32
    %2 = arith.cmpi ne, %1, %c0_i32_0 : i32
    scf.if %2 {
      %c0_91 = arith.constant 0 : index
      %c0_92 = arith.constant 0 : index
      %243 = vector.load %arg3[%c0_91, %c0_92] : memref<16x128xbf16, #tpu.memory_space<vmem>>, vector<16x128xbf16>
      %c0_93 = arith.constant 0 : index
      %c0_94 = arith.constant 0 : index
      %244 = vector.load %arg9[%c0_93, %c0_94] : memref<16x128xbf16, #tpu.memory_space<vmem>>, vector<16x128xbf16>
      tpu.vector_store %arg9[%c0_93, %c0_94], %243 {strides = array<i32>} : memref<16x128xbf16, #tpu.memory_space<vmem>>, vector<16x128xbf16>,
    } else {
    }
    %c0 = arith.constant 0 : index
    %c0_1 = arith.constant 0 : index
    %3 = vector.load %arg4[%c0, %c0_1] : memref<16x256xbf16, #tpu.memory_space<vmem>>, vector<16x256xbf16>
    %c0_2 = arith.constant 0 : index
    %c0_3 = arith.constant 0 : index
    %4 = vector.load %arg5[%c0_2, %c0_3] : memref<128x256xbf16, #tpu.memory_space<vmem>>, vector<128x256xbf16>
    %c0_4 = arith.constant 0 : index
    %c0_5 = arith.constant 0 : index
    %5 = vector.load %arg6[%c0_4, %c0_5] : memref<1x256xf32, #tpu.memory_space<vmem>>, vector<1x256xf32>
    %c0_6 = arith.constant 0 : index
    %c0_7 = arith.constant 0 : index
    %6 = vector.load %arg9[%c0_6, %c0_7] : memref<16x128xbf16, #tpu.memory_space<vmem>>, vector<16x128xbf16>
    %c0_i32_8 = arith.constant 0 : i32
    %7 = arith.index_cast %c0_i32_8 : i32 to index
    %c0_9 = arith.constant 0 : index
    %c0_10 = arith.constant 0 : index
    %8 = vector.load %arg2[%7, %c0_9, %c0_10] : memref<8x16x16xbf16, #tpu.memory_space<vmem>>, vector<1x16x16xbf16>
    %9 = vector.shape_cast %8 : vector<1x16x16xbf16> to vector<16x16xbf16>
    %cst = arith.constant dense<0.000000e+00> : vector<16x256xf32>
    %10 = tpu.matmul %9, %3, %cst {dimension_numbers = #tpu.dot_dimension_numbers<[1], [0], [0], [1], [0, 0, 1, 1], [], []>} : vector<16x16xbf16>, vector<16x256xbf16>, vector<16x256xf32> -> vector<16x256xf32>
    %cst_11 = arith.constant dense<0.000000e+00> : vector<16x256xf32>
    %11 = tpu.matmul %6, %4, %cst_11 {dimension_numbers = #tpu.dot_dimension_numbers<[1], [0], [0], [1], [0, 0, 1, 1], [], []>} : vector<16x128xbf16>, vector<128x256xbf16>, vector<16x256xf32> -> vector<16x256xf32>
    %12 = arith.addf %10, %11 : vector<16x256xf32>
    %13 = vector.broadcast %5 : vector<1x256xf32> to vector<16x256xf32>
    %14 = arith.addf %12, %13 : vector<16x256xf32>
    %15 = vector.extract_strided_slice %14 {offsets = [0, 0], sizes = [16, 128], strides = [1, 1]} : vector<16x256xf32> to vector<16x128xf32>
    %16 = arith.truncf %15 : vector<16x128xf32> to vector<16x128xbf16>
    %17 = vector.extract_strided_slice %14 {offsets = [0, 128], sizes = [16, 128], strides = [1, 1]} : vector<16x256xf32> to vector<16x128xf32>
    %cst_12 = arith.constant dense<0xFF800000> : vector<16xf32>
    %18 = vector.multi_reduction <maximumf>, %17, %cst_12 [1] : vector<16x128xf32> to vector<16xf32>
    %19 = vector.shape_cast %18 : vector<16xf32> to vector<16x1xf32>
    %20 = vector.broadcast %19 : vector<16x1xf32> to vector<16x128xf32>
    %21 = arith.subf %17, %20 : vector<16x128xf32>
    %22 = math.exp %21 : vector<16x128xf32>
    %cst_13 = arith.constant dense<0.000000e+00> : vector<16xf32>
    %23 = vector.multi_reduction <add>, %22, %cst_13 [1] : vector<16x128xf32> to vector<16xf32>
    %24 = vector.shape_cast %23 : vector<16xf32> to vector<16x1xf32>
    %25 = math.log %24 : vector<16x1xf32>
    %26 = vector.broadcast %25 : vector<16x1xf32> to vector<16x128xf32>
    %27 = arith.subf %21, %26 : vector<16x128xf32>
    %28 = arith.index_cast %c0_i32_8 : i32 to index
    %c0_14 = arith.constant 0 : index
    %c0_15 = arith.constant 0 : index
    %29 = vector.load %arg7[%28, %c0_14, %c0_15] : memref<8x16x128xf32, #tpu.memory_space<vmem>>, vector<1x16x128xf32>
    %30 = vector.shape_cast %29 : vector<1x16x128xf32> to vector<16x128xf32>
    %31 = vector.shape_cast %27 : vector<16x128xf32> to vector<1x16x128xf32>
    tpu.vector_store %arg7[%28, %c0_14, %c0_15], %31 {strides = array<i32>} : memref<8x16x128xf32, #tpu.memory_space<vmem>>, vector<1x16x128xf32>,
    %c8_i32 = arith.constant 8 : i32
    %32 = arith.muli %arg1, %c8_i32 : i32
    %33 = arith.addi %32, %c0_i32_8 : i32
    %c20_i32 = arith.constant 20 : i32
    %34 = arith.cmpi slt, %33, %c20_i32 : i32
    %35 = arith.select %34, %16, %6 : vector<16x128xbf16>
    %c1_i32 = arith.constant 1 : i32
    %36 = arith.index_cast %c1_i32 : i32 to index
    %c0_16 = arith.constant 0 : index
    %c0_17 = arith.constant 0 : index
    %37 = vector.load %arg2[%36, %c0_16, %c0_17] : memref<8x16x16xbf16, #tpu.memory_space<vmem>>, vector<1x16x16xbf16>
    %38 = vector.shape_cast %37 : vector<1x16x16xbf16> to vector<16x16xbf16>
    %cst_18 = arith.constant dense<0.000000e+00> : vector<16x256xf32>
    %39 = tpu.matmul %38, %3, %cst_18 {dimension_numbers = #tpu.dot_dimension_numbers<[1], [0], [0], [1], [0, 0, 1, 1], [], []>} : vector<16x16xbf16>, vector<16x256xbf16>, vector<16x256xf32> -> vector<16x256xf32>
    %cst_19 = arith.constant dense<0.000000e+00> : vector<16x256xf32>
    %40 = tpu.matmul %35, %4, %cst_19 {dimension_numbers = #tpu.dot_dimension_numbers<[1], [0], [0], [1], [0, 0, 1, 1], [], []>} : vector<16x128xbf16>, vector<128x256xbf16>, vector<16x256xf32> -> vector<16x256xf32>
    %41 = arith.addf %39, %40 : vector<16x256xf32>
    %42 = vector.broadcast %5 : vector<1x256xf32> to vector<16x256xf32>
    %43 = arith.addf %41, %42 : vector<16x256xf32>
    %44 = vector.extract_strided_slice %43 {offsets = [0, 0], sizes = [16, 128], strides = [1, 1]} : vector<16x256xf32> to vector<16x128xf32>
    %45 = arith.truncf %44 : vector<16x128xf32> to vector<16x128xbf16>
    %46 = vector.extract_strided_slice %43 {offsets = [0, 128], sizes = [16, 128], strides = [1, 1]} : vector<16x256xf32> to vector<16x128xf32>
    %cst_20 = arith.constant dense<0xFF800000> : vector<16xf32>
    %47 = vector.multi_reduction <maximumf>, %46, %cst_20 [1] : vector<16x128xf32> to vector<16xf32>
    %48 = vector.shape_cast %47 : vector<16xf32> to vector<16x1xf32>
    %49 = vector.broadcast %48 : vector<16x1xf32> to vector<16x128xf32>
    %50 = arith.subf %46, %49 : vector<16x128xf32>
    %51 = math.exp %50 : vector<16x128xf32>
    %cst_21 = arith.constant dense<0.000000e+00> : vector<16xf32>
    %52 = vector.multi_reduction <add>, %51, %cst_21 [1] : vector<16x128xf32> to vector<16xf32>
    %53 = vector.shape_cast %52 : vector<16xf32> to vector<16x1xf32>
    %54 = math.log %53 : vector<16x1xf32>
    %55 = vector.broadcast %54 : vector<16x1xf32> to vector<16x128xf32>
    %56 = arith.subf %50, %55 : vector<16x128xf32>
    %57 = arith.index_cast %c1_i32 : i32 to index
    %c0_22 = arith.constant 0 : index
    %c0_23 = arith.constant 0 : index
    %58 = vector.load %arg7[%57, %c0_22, %c0_23] : memref<8x16x128xf32, #tpu.memory_space<vmem>>, vector<1x16x128xf32>
    %59 = vector.shape_cast %58 : vector<1x16x128xf32> to vector<16x128xf32>
    %60 = vector.shape_cast %56 : vector<16x128xf32> to vector<1x16x128xf32>
    tpu.vector_store %arg7[%57, %c0_22, %c0_23], %60 {strides = array<i32>} : memref<8x16x128xf32, #tpu.memory_space<vmem>>, vector<1x16x128xf32>,
    %c8_i32_24 = arith.constant 8 : i32
    %61 = arith.muli %arg1, %c8_i32_24 : i32
    %62 = arith.addi %61, %c1_i32 : i32
    %c20_i32_25 = arith.constant 20 : i32
    %63 = arith.cmpi slt, %62, %c20_i32_25 : i32
    %64 = arith.select %63, %45, %35 : vector<16x128xbf16>
    %c2_i32 = arith.constant 2 : i32
    %65 = arith.index_cast %c2_i32 : i32 to index
    %c0_26 = arith.constant 0 : index
    %c0_27 = arith.constant 0 : index
    %66 = vector.load %arg2[%65, %c0_26, %c0_27] : memref<8x16x16xbf16, #tpu.memory_space<vmem>>, vector<1x16x16xbf16>
    %67 = vector.shape_cast %66 : vector<1x16x16xbf16> to vector<16x16xbf16>
    %cst_28 = arith.constant dense<0.000000e+00> : vector<16x256xf32>
    %68 = tpu.matmul %67, %3, %cst_28 {dimension_numbers = #tpu.dot_dimension_numbers<[1], [0], [0], [1], [0, 0, 1, 1], [], []>} : vector<16x16xbf16>, vector<16x256xbf16>, vector<16x256xf32> -> vector<16x256xf32>
    %cst_29 = arith.constant dense<0.000000e+00> : vector<16x256xf32>
    %69 = tpu.matmul %64, %4, %cst_29 {dimension_numbers = #tpu.dot_dimension_numbers<[1], [0], [0], [1], [0, 0, 1, 1], [], []>} : vector<16x128xbf16>, vector<128x256xbf16>, vector<16x256xf32> -> vector<16x256xf32>
    %70 = arith.addf %68, %69 : vector<16x256xf32>
    %71 = vector.broadcast %5 : vector<1x256xf32> to vector<16x256xf32>
    %72 = arith.addf %70, %71 : vector<16x256xf32>
    %73 = vector.extract_strided_slice %72 {offsets = [0, 0], sizes = [16, 128], strides = [1, 1]} : vector<16x256xf32> to vector<16x128xf32>
    %74 = arith.truncf %73 : vector<16x128xf32> to vector<16x128xbf16>
    %75 = vector.extract_strided_slice %72 {offsets = [0, 128], sizes = [16, 128], strides = [1, 1]} : vector<16x256xf32> to vector<16x128xf32>
    %cst_30 = arith.constant dense<0xFF800000> : vector<16xf32>
    %76 = vector.multi_reduction <maximumf>, %75, %cst_30 [1] : vector<16x128xf32> to vector<16xf32>
    %77 = vector.shape_cast %76 : vector<16xf32> to vector<16x1xf32>
    %78 = vector.broadcast %77 : vector<16x1xf32> to vector<16x128xf32>
    %79 = arith.subf %75, %78 : vector<16x128xf32>
    %80 = math.exp %79 : vector<16x128xf32>
    %cst_31 = arith.constant dense<0.000000e+00> : vector<16xf32>
    %81 = vector.multi_reduction <add>, %80, %cst_31 [1] : vector<16x128xf32> to vector<16xf32>
    %82 = vector.shape_cast %81 : vector<16xf32> to vector<16x1xf32>
    %83 = math.log %82 : vector<16x1xf32>
    %84 = vector.broadcast %83 : vector<16x1xf32> to vector<16x128xf32>
    %85 = arith.subf %79, %84 : vector<16x128xf32>
    %86 = arith.index_cast %c2_i32 : i32 to index
    %c0_32 = arith.constant 0 : index
    %c0_33 = arith.constant 0 : index
    %87 = vector.load %arg7[%86, %c0_32, %c0_33] : memref<8x16x128xf32, #tpu.memory_space<vmem>>, vector<1x16x128xf32>
    %88 = vector.shape_cast %87 : vector<1x16x128xf32> to vector<16x128xf32>
    %89 = vector.shape_cast %85 : vector<16x128xf32> to vector<1x16x128xf32>
    tpu.vector_store %arg7[%86, %c0_32, %c0_33], %89 {strides = array<i32>} : memref<8x16x128xf32, #tpu.memory_space<vmem>>, vector<1x16x128xf32>,
    %c8_i32_34 = arith.constant 8 : i32
    %90 = arith.muli %arg1, %c8_i32_34 : i32
    %91 = arith.addi %90, %c2_i32 : i32
    %c20_i32_35 = arith.constant 20 : i32
    %92 = arith.cmpi slt, %91, %c20_i32_35 : i32
    %93 = arith.select %92, %74, %64 : vector<16x128xbf16>
    %c3_i32 = arith.constant 3 : i32
    %94 = arith.index_cast %c3_i32 : i32 to index
    %c0_36 = arith.constant 0 : index
    %c0_37 = arith.constant 0 : index
    %95 = vector.load %arg2[%94, %c0_36, %c0_37] : memref<8x16x16xbf16, #tpu.memory_space<vmem>>, vector<1x16x16xbf16>
    %96 = vector.shape_cast %95 : vector<1x16x16xbf16> to vector<16x16xbf16>
    %cst_38 = arith.constant dense<0.000000e+00> : vector<16x256xf32>
    %97 = tpu.matmul %96, %3, %cst_38 {dimension_numbers = #tpu.dot_dimension_numbers<[1], [0], [0], [1], [0, 0, 1, 1], [], []>} : vector<16x16xbf16>, vector<16x256xbf16>, vector<16x256xf32> -> vector<16x256xf32>
    %cst_39 = arith.constant dense<0.000000e+00> : vector<16x256xf32>
    %98 = tpu.matmul %93, %4, %cst_39 {dimension_numbers = #tpu.dot_dimension_numbers<[1], [0], [0], [1], [0, 0, 1, 1], [], []>} : vector<16x128xbf16>, vector<128x256xbf16>, vector<16x256xf32> -> vector<16x256xf32>
    %99 = arith.addf %97, %98 : vector<16x256xf32>
    %100 = vector.broadcast %5 : vector<1x256xf32> to vector<16x256xf32>
    %101 = arith.addf %99, %100 : vector<16x256xf32>
    %102 = vector.extract_strided_slice %101 {offsets = [0, 0], sizes = [16, 128], strides = [1, 1]} : vector<16x256xf32> to vector<16x128xf32>
    %103 = arith.truncf %102 : vector<16x128xf32> to vector<16x128xbf16>
    %104 = vector.extract_strided_slice %101 {offsets = [0, 128], sizes = [16, 128], strides = [1, 1]} : vector<16x256xf32> to vector<16x128xf32>
    %cst_40 = arith.constant dense<0xFF800000> : vector<16xf32>
    %105 = vector.multi_reduction <maximumf>, %104, %cst_40 [1] : vector<16x128xf32> to vector<16xf32>
    %106 = vector.shape_cast %105 : vector<16xf32> to vector<16x1xf32>
    %107 = vector.broadcast %106 : vector<16x1xf32> to vector<16x128xf32>
    %108 = arith.subf %104, %107 : vector<16x128xf32>
    %109 = math.exp %108 : vector<16x128xf32>
    %cst_41 = arith.constant dense<0.000000e+00> : vector<16xf32>
    %110 = vector.multi_reduction <add>, %109, %cst_41 [1] : vector<16x128xf32> to vector<16xf32>
    %111 = vector.shape_cast %110 : vector<16xf32> to vector<16x1xf32>
    %112 = math.log %111 : vector<16x1xf32>
    %113 = vector.broadcast %112 : vector<16x1xf32> to vector<16x128xf32>
    %114 = arith.subf %108, %113 : vector<16x128xf32>
    %115 = arith.index_cast %c3_i32 : i32 to index
    %c0_42 = arith.constant 0 : index
    %c0_43 = arith.constant 0 : index
    %116 = vector.load %arg7[%115, %c0_42, %c0_43] : memref<8x16x128xf32, #tpu.memory_space<vmem>>, vector<1x16x128xf32>
    %117 = vector.shape_cast %116 : vector<1x16x128xf32> to vector<16x128xf32>
    %118 = vector.shape_cast %114 : vector<16x128xf32> to vector<1x16x128xf32>
    tpu.vector_store %arg7[%115, %c0_42, %c0_43], %118 {strides = array<i32>} : memref<8x16x128xf32, #tpu.memory_space<vmem>>, vector<1x16x128xf32>,
    %c8_i32_44 = arith.constant 8 : i32
    %119 = arith.muli %arg1, %c8_i32_44 : i32
    %120 = arith.addi %119, %c3_i32 : i32
    %c20_i32_45 = arith.constant 20 : i32
    %121 = arith.cmpi slt, %120, %c20_i32_45 : i32
    %122 = arith.select %121, %103, %93 : vector<16x128xbf16>
    %c4_i32 = arith.constant 4 : i32
    %123 = arith.index_cast %c4_i32 : i32 to index
    %c0_46 = arith.constant 0 : index
    %c0_47 = arith.constant 0 : index
    %124 = vector.load %arg2[%123, %c0_46, %c0_47] : memref<8x16x16xbf16, #tpu.memory_space<vmem>>, vector<1x16x16xbf16>
    %125 = vector.shape_cast %124 : vector<1x16x16xbf16> to vector<16x16xbf16>
    %cst_48 = arith.constant dense<0.000000e+00> : vector<16x256xf32>
    %126 = tpu.matmul %125, %3, %cst_48 {dimension_numbers = #tpu.dot_dimension_numbers<[1], [0], [0], [1], [0, 0, 1, 1], [], []>} : vector<16x16xbf16>, vector<16x256xbf16>, vector<16x256xf32> -> vector<16x256xf32>
    %cst_49 = arith.constant dense<0.000000e+00> : vector<16x256xf32>
    %127 = tpu.matmul %122, %4, %cst_49 {dimension_numbers = #tpu.dot_dimension_numbers<[1], [0], [0], [1], [0, 0, 1, 1], [], []>} : vector<16x128xbf16>, vector<128x256xbf16>, vector<16x256xf32> -> vector<16x256xf32>
    %128 = arith.addf %126, %127 : vector<16x256xf32>
    %129 = vector.broadcast %5 : vector<1x256xf32> to vector<16x256xf32>
    %130 = arith.addf %128, %129 : vector<16x256xf32>
    %131 = vector.extract_strided_slice %130 {offsets = [0, 0], sizes = [16, 128], strides = [1, 1]} : vector<16x256xf32> to vector<16x128xf32>
    %132 = arith.truncf %131 : vector<16x128xf32> to vector<16x128xbf16>
    %133 = vector.extract_strided_slice %130 {offsets = [0, 128], sizes = [16, 128], strides = [1, 1]} : vector<16x256xf32> to vector<16x128xf32>
    %cst_50 = arith.constant dense<0xFF800000> : vector<16xf32>
    %134 = vector.multi_reduction <maximumf>, %133, %cst_50 [1] : vector<16x128xf32> to vector<16xf32>
    %135 = vector.shape_cast %134 : vector<16xf32> to vector<16x1xf32>
    %136 = vector.broadcast %135 : vector<16x1xf32> to vector<16x128xf32>
    %137 = arith.subf %133, %136 : vector<16x128xf32>
    %138 = math.exp %137 : vector<16x128xf32>
    %cst_51 = arith.constant dense<0.000000e+00> : vector<16xf32>
    %139 = vector.multi_reduction <add>, %138, %cst_51 [1] : vector<16x128xf32> to vector<16xf32>
    %140 = vector.shape_cast %139 : vector<16xf32> to vector<16x1xf32>
    %141 = math.log %140 : vector<16x1xf32>
    %142 = vector.broadcast %141 : vector<16x1xf32> to vector<16x128xf32>
    %143 = arith.subf %137, %142 : vector<16x128xf32>
    %144 = arith.index_cast %c4_i32 : i32 to index
    %c0_52 = arith.constant 0 : index
    %c0_53 = arith.constant 0 : index
    %145 = vector.load %arg7[%144, %c0_52, %c0_53] : memref<8x16x128xf32, #tpu.memory_space<vmem>>, vector<1x16x128xf32>
    %146 = vector.shape_cast %145 : vector<1x16x128xf32> to vector<16x128xf32>
    %147 = vector.shape_cast %143 : vector<16x128xf32> to vector<1x16x128xf32>
    tpu.vector_store %arg7[%144, %c0_52, %c0_53], %147 {strides = array<i32>} : memref<8x16x128xf32, #tpu.memory_space<vmem>>, vector<1x16x128xf32>,
    %c8_i32_54 = arith.constant 8 : i32
    %148 = arith.muli %arg1, %c8_i32_54 : i32
    %149 = arith.addi %148, %c4_i32 : i32
    %c20_i32_55 = arith.constant 20 : i32
    %150 = arith.cmpi slt, %149, %c20_i32_55 : i32
    %151 = arith.select %150, %132, %122 : vector<16x128xbf16>
    %c5_i32 = arith.constant 5 : i32
    %152 = arith.index_cast %c5_i32 : i32 to index
    %c0_56 = arith.constant 0 : index
    %c0_57 = arith.constant 0 : index
    %153 = vector.load %arg2[%152, %c0_56, %c0_57] : memref<8x16x16xbf16, #tpu.memory_space<vmem>>, vector<1x16x16xbf16>
    %154 = vector.shape_cast %153 : vector<1x16x16xbf16> to vector<16x16xbf16>
    %cst_58 = arith.constant dense<0.000000e+00> : vector<16x256xf32>
    %155 = tpu.matmul %154, %3, %cst_58 {dimension_numbers = #tpu.dot_dimension_numbers<[1], [0], [0], [1], [0, 0, 1, 1], [], []>} : vector<16x16xbf16>, vector<16x256xbf16>, vector<16x256xf32> -> vector<16x256xf32>
    %cst_59 = arith.constant dense<0.000000e+00> : vector<16x256xf32>
    %156 = tpu.matmul %151, %4, %cst_59 {dimension_numbers = #tpu.dot_dimension_numbers<[1], [0], [0], [1], [0, 0, 1, 1], [], []>} : vector<16x128xbf16>, vector<128x256xbf16>, vector<16x256xf32> -> vector<16x256xf32>
    %157 = arith.addf %155, %156 : vector<16x256xf32>
    %158 = vector.broadcast %5 : vector<1x256xf32> to vector<16x256xf32>
    %159 = arith.addf %157, %158 : vector<16x256xf32>
    %160 = vector.extract_strided_slice %159 {offsets = [0, 0], sizes = [16, 128], strides = [1, 1]} : vector<16x256xf32> to vector<16x128xf32>
    %161 = arith.truncf %160 : vector<16x128xf32> to vector<16x128xbf16>
    %162 = vector.extract_strided_slice %159 {offsets = [0, 128], sizes = [16, 128], strides = [1, 1]} : vector<16x256xf32> to vector<16x128xf32>
    %cst_60 = arith.constant dense<0xFF800000> : vector<16xf32>
    %163 = vector.multi_reduction <maximumf>, %162, %cst_60 [1] : vector<16x128xf32> to vector<16xf32>
    %164 = vector.shape_cast %163 : vector<16xf32> to vector<16x1xf32>
    %165 = vector.broadcast %164 : vector<16x1xf32> to vector<16x128xf32>
    %166 = arith.subf %162, %165 : vector<16x128xf32>
    %167 = math.exp %166 : vector<16x128xf32>
    %cst_61 = arith.constant dense<0.000000e+00> : vector<16xf32>
    %168 = vector.multi_reduction <add>, %167, %cst_61 [1] : vector<16x128xf32> to vector<16xf32>
    %169 = vector.shape_cast %168 : vector<16xf32> to vector<16x1xf32>
    %170 = math.log %169 : vector<16x1xf32>
    %171 = vector.broadcast %170 : vector<16x1xf32> to vector<16x128xf32>
    %172 = arith.subf %166, %171 : vector<16x128xf32>
    %173 = arith.index_cast %c5_i32 : i32 to index
    %c0_62 = arith.constant 0 : index
    %c0_63 = arith.constant 0 : index
    %174 = vector.load %arg7[%173, %c0_62, %c0_63] : memref<8x16x128xf32, #tpu.memory_space<vmem>>, vector<1x16x128xf32>
    %175 = vector.shape_cast %174 : vector<1x16x128xf32> to vector<16x128xf32>
    %176 = vector.shape_cast %172 : vector<16x128xf32> to vector<1x16x128xf32>
    tpu.vector_store %arg7[%173, %c0_62, %c0_63], %176 {strides = array<i32>} : memref<8x16x128xf32, #tpu.memory_space<vmem>>, vector<1x16x128xf32>,
    %c8_i32_64 = arith.constant 8 : i32
    %177 = arith.muli %arg1, %c8_i32_64 : i32
    %178 = arith.addi %177, %c5_i32 : i32
    %c20_i32_65 = arith.constant 20 : i32
    %179 = arith.cmpi slt, %178, %c20_i32_65 : i32
    %180 = arith.select %179, %161, %151 : vector<16x128xbf16>
    %c6_i32 = arith.constant 6 : i32
    %181 = arith.index_cast %c6_i32 : i32 to index
    %c0_66 = arith.constant 0 : index
    %c0_67 = arith.constant 0 : index
    %182 = vector.load %arg2[%181, %c0_66, %c0_67] : memref<8x16x16xbf16, #tpu.memory_space<vmem>>, vector<1x16x16xbf16>
    %183 = vector.shape_cast %182 : vector<1x16x16xbf16> to vector<16x16xbf16>
    %cst_68 = arith.constant dense<0.000000e+00> : vector<16x256xf32>
    %184 = tpu.matmul %183, %3, %cst_68 {dimension_numbers = #tpu.dot_dimension_numbers<[1], [0], [0], [1], [0, 0, 1, 1], [], []>} : vector<16x16xbf16>, vector<16x256xbf16>, vector<16x256xf32> -> vector<16x256xf32>
    %cst_69 = arith.constant dense<0.000000e+00> : vector<16x256xf32>
    %185 = tpu.matmul %180, %4, %cst_69 {dimension_numbers = #tpu.dot_dimension_numbers<[1], [0], [0], [1], [0, 0, 1, 1], [], []>} : vector<16x128xbf16>, vector<128x256xbf16>, vector<16x256xf32> -> vector<16x256xf32>
    %186 = arith.addf %184, %185 : vector<16x256xf32>
    %187 = vector.broadcast %5 : vector<1x256xf32> to vector<16x256xf32>
    %188 = arith.addf %186, %187 : vector<16x256xf32>
    %189 = vector.extract_strided_slice %188 {offsets = [0, 0], sizes = [16, 128], strides = [1, 1]} : vector<16x256xf32> to vector<16x128xf32>
    %190 = arith.truncf %189 : vector<16x128xf32> to vector<16x128xbf16>
    %191 = vector.extract_strided_slice %188 {offsets = [0, 128], sizes = [16, 128], strides = [1, 1]} : vector<16x256xf32> to vector<16x128xf32>
    %cst_70 = arith.constant dense<0xFF800000> : vector<16xf32>
    %192 = vector.multi_reduction <maximumf>, %191, %cst_70 [1] : vector<16x128xf32> to vector<16xf32>
    %193 = vector.shape_cast %192 : vector<16xf32> to vector<16x1xf32>
    %194 = vector.broadcast %193 : vector<16x1xf32> to vector<16x128xf32>
    %195 = arith.subf %191, %194 : vector<16x128xf32>
    %196 = math.exp %195 : vector<16x128xf32>
    %cst_71 = arith.constant dense<0.000000e+00> : vector<16xf32>
    %197 = vector.multi_reduction <add>, %196, %cst_71 [1] : vector<16x128xf32> to vector<16xf32>
    %198 = vector.shape_cast %197 : vector<16xf32> to vector<16x1xf32>
    %199 = math.log %198 : vector<16x1xf32>
    %200 = vector.broadcast %199 : vector<16x1xf32> to vector<16x128xf32>
    %201 = arith.subf %195, %200 : vector<16x128xf32>
    %202 = arith.index_cast %c6_i32 : i32 to index
    %c0_72 = arith.constant 0 : index
    %c0_73 = arith.constant 0 : index
    %203 = vector.load %arg7[%202, %c0_72, %c0_73] : memref<8x16x128xf32, #tpu.memory_space<vmem>>, vector<1x16x128xf32>
    %204 = vector.shape_cast %203 : vector<1x16x128xf32> to vector<16x128xf32>
    %205 = vector.shape_cast %201 : vector<16x128xf32> to vector<1x16x128xf32>
    tpu.vector_store %arg7[%202, %c0_72, %c0_73], %205 {strides = array<i32>} : memref<8x16x128xf32, #tpu.memory_space<vmem>>, vector<1x16x128xf32>,
    %c8_i32_74 = arith.constant 8 : i32
    %206 = arith.muli %arg1, %c8_i32_74 : i32
    %207 = arith.addi %206, %c6_i32 : i32
    %c20_i32_75 = arith.constant 20 : i32
    %208 = arith.cmpi slt, %207, %c20_i32_75 : i32
    %209 = arith.select %208, %190, %180 : vector<16x128xbf16>
    %c7_i32 = arith.constant 7 : i32
    %210 = arith.index_cast %c7_i32 : i32 to index
    %c0_76 = arith.constant 0 : index
    %c0_77 = arith.constant 0 : index
    %211 = vector.load %arg2[%210, %c0_76, %c0_77] : memref<8x16x16xbf16, #tpu.memory_space<vmem>>, vector<1x16x16xbf16>
    %212 = vector.shape_cast %211 : vector<1x16x16xbf16> to vector<16x16xbf16>
    %cst_78 = arith.constant dense<0.000000e+00> : vector<16x256xf32>
    %213 = tpu.matmul %212, %3, %cst_78 {dimension_numbers = #tpu.dot_dimension_numbers<[1], [0], [0], [1], [0, 0, 1, 1], [], []>} : vector<16x16xbf16>, vector<16x256xbf16>, vector<16x256xf32> -> vector<16x256xf32>
    %cst_79 = arith.constant dense<0.000000e+00> : vector<16x256xf32>
    %214 = tpu.matmul %209, %4, %cst_79 {dimension_numbers = #tpu.dot_dimension_numbers<[1], [0], [0], [1], [0, 0, 1, 1], [], []>} : vector<16x128xbf16>, vector<128x256xbf16>, vector<16x256xf32> -> vector<16x256xf32>
    %215 = arith.addf %213, %214 : vector<16x256xf32>
    %216 = vector.broadcast %5 : vector<1x256xf32> to vector<16x256xf32>
    %217 = arith.addf %215, %216 : vector<16x256xf32>
    %218 = vector.extract_strided_slice %217 {offsets = [0, 0], sizes = [16, 128], strides = [1, 1]} : vector<16x256xf32> to vector<16x128xf32>
    %219 = arith.truncf %218 : vector<16x128xf32> to vector<16x128xbf16>
    %220 = vector.extract_strided_slice %217 {offsets = [0, 128], sizes = [16, 128], strides = [1, 1]} : vector<16x256xf32> to vector<16x128xf32>
    %cst_80 = arith.constant dense<0xFF800000> : vector<16xf32>
    %221 = vector.multi_reduction <maximumf>, %220, %cst_80 [1] : vector<16x128xf32> to vector<16xf32>
    %222 = vector.shape_cast %221 : vector<16xf32> to vector<16x1xf32>
    %223 = vector.broadcast %222 : vector<16x1xf32> to vector<16x128xf32>
    %224 = arith.subf %220, %223 : vector<16x128xf32>
    %225 = math.exp %224 : vector<16x128xf32>
    %cst_81 = arith.constant dense<0.000000e+00> : vector<16xf32>
    %226 = vector.multi_reduction <add>, %225, %cst_81 [1] : vector<16x128xf32> to vector<16xf32>
    %227 = vector.shape_cast %226 : vector<16xf32> to vector<16x1xf32>
    %228 = math.log %227 : vector<16x1xf32>
    %229 = vector.broadcast %228 : vector<16x1xf32> to vector<16x128xf32>
    %230 = arith.subf %224, %229 : vector<16x128xf32>
    %231 = arith.index_cast %c7_i32 : i32 to index
    %c0_82 = arith.constant 0 : index
    %c0_83 = arith.constant 0 : index
    %232 = vector.load %arg7[%231, %c0_82, %c0_83] : memref<8x16x128xf32, #tpu.memory_space<vmem>>, vector<1x16x128xf32>
    %233 = vector.shape_cast %232 : vector<1x16x128xf32> to vector<16x128xf32>
    %234 = vector.shape_cast %230 : vector<16x128xf32> to vector<1x16x128xf32>
    tpu.vector_store %arg7[%231, %c0_82, %c0_83], %234 {strides = array<i32>} : memref<8x16x128xf32, #tpu.memory_space<vmem>>, vector<1x16x128xf32>,
    %c8_i32_84 = arith.constant 8 : i32
    %235 = arith.muli %arg1, %c8_i32_84 : i32
    %236 = arith.addi %235, %c7_i32 : i32
    %c20_i32_85 = arith.constant 20 : i32
    %237 = arith.cmpi slt, %236, %c20_i32_85 : i32
    %238 = arith.select %237, %219, %209 : vector<16x128xbf16>
    %c8_i32_86 = arith.constant 8 : i32
    %c0_87 = arith.constant 0 : index
    %c0_88 = arith.constant 0 : index
    %239 = vector.load %arg9[%c0_87, %c0_88] : memref<16x128xbf16, #tpu.memory_space<vmem>>, vector<16x128xbf16>
    tpu.vector_store %arg9[%c0_87, %c0_88], %238 {strides = array<i32>} : memref<16x128xbf16, #tpu.memory_space<vmem>>, vector<16x128xbf16>,
    %c2_i32_89 = arith.constant 2 : i32
    %240 = arith.cmpi eq, %arg1, %c2_i32_89 : i32
    %241 = arith.extui %240 : i1 to i32
    %c0_i32_90 = arith.constant 0 : i32
    %242 = arith.cmpi ne, %241, %c0_i32_90 : i32
    scf.if %242 {
      %243 = arith.extf %238 : vector<16x128xbf16> to vector<16x128xf32>
      %c0_91 = arith.constant 0 : index
      %c0_92 = arith.constant 0 : index
      %244 = vector.load %arg8[%c0_91, %c0_92] : memref<16x128xf32, #tpu.memory_space<vmem>>, vector<16x128xf32>
      tpu.vector_store %arg8[%c0_91, %c0_92], %243 {strides = array<i32>} : memref<16x128xf32, #tpu.memory_space<vmem>>, vector<16x128xf32>,
    } else {
    }
    return
  }
  func.func @transform_0(%arg0: i32, %arg1: i32) -> (i32, i32, i32) {
    %c0_i32 = arith.constant 0 : i32
    %c0_i32_0 = arith.constant 0 : i32
    return %arg1, %arg0, %c0_i32 : i32, i32, i32
  }
  func.func @transform_1(%arg0: i32, %arg1: i32) -> (i32, i32) {
    %c0_i32 = arith.constant 0 : i32
    %c0_i32_0 = arith.constant 0 : i32
    return %arg0, %c0_i32 : i32, i32
  }
  func.func @transform_2(%arg0: i32, %arg1: i32) -> (i32, i32) {
    %c0_i32 = arith.constant 0 : i32
    %c0_i32_0 = arith.constant 0 : i32
    %c0_i32_1 = arith.constant 0 : i32
    return %c0_i32, %c0_i32_0 : i32, i32
  }
  func.func @transform_3(%arg0: i32, %arg1: i32) -> (i32, i32) {
    %c0_i32 = arith.constant 0 : i32
    %c0_i32_0 = arith.constant 0 : i32
    %c0_i32_1 = arith.constant 0 : i32
    return %c0_i32, %c0_i32_0 : i32, i32
  }
  func.func @transform_4(%arg0: i32, %arg1: i32) -> (i32, i32) {
    %c0_i32 = arith.constant 0 : i32
    %c0_i32_0 = arith.constant 0 : i32
    %c0_i32_1 = arith.constant 0 : i32
    return %c0_i32, %c0_i32_0 : i32, i32
  }
  func.func @transform_5(%arg0: i32, %arg1: i32) -> (i32, i32, i32) {
    %c0_i32 = arith.constant 0 : i32
    %c0_i32_0 = arith.constant 0 : i32
    return %arg1, %arg0, %c0_i32 : i32, i32, i32
  }
  func.func @transform_6(%arg0: i32, %arg1: i32) -> (i32, i32) {
    %c0_i32 = arith.constant 0 : i32
    %c0_i32_0 = arith.constant 0 : i32
    return %arg0, %c0_i32 : i32, i32
  }
}

</mosaic_0001>

<bundles_post_ra>
// kernel: rnn_forward_sequence.1
= control target key start
LH: loop header
LB: loop body
LE: loop exit
PB: predicated region body
PF: predicated region fallthrough
CT: control target
= control target key end

     0   :  { %s2195_s21 = smov 0   ;;  %s2197_s22 = smov 0   ;;  %s2799_s0 = inlined_call_operand.vmem [shape: bf16[24,32,16], index: 0, kind: input, shape index: {}]   ;;  %s2800_s1 = inlined_call_operand.vmem [shape: bf16[32,128], index: 1, kind: input, shape index: {}]   ;;  %s2801_s2 = inlined_call_operand.vmem [shape: bf16[16,256], index: 2, kind: input, shape index: {}]   ;;  %s2802_s3 = inlined_call_operand.vmem [shape: bf16[128,256], index: 3, kind: input, shape index: {}]   ;;  %s2803_s4 = inlined_call_operand.vmem [shape: f32[1,256], index: 4, kind: input, shape index: {}]   ;;  %s2804_s5 = inlined_call_operand.vmem [shape: f32[24,32,128], index: 5, kind: output, shape index: {0}]   ;;  %s2805_s6 = inlined_call_operand.vmem [shape: f32[32,128], index: 6, kind: output, shape index: {1}]  }
   0x1   :  { %s2199_s23 = smov 0   ;;  %s2201_s24 = smov 0  }
   0x2   :  { %s2203_s25 = smov 0   ;;  %s2205_s26 = smov 0  }
   0x3   :  { %s2207_s27 = smov 0  }
   0x4 LB: > { %s26_s28 = sadd.s32 1, %s2149_s25  ;;  %s29_s29 = sadd.s32 1, %s2153_s26  ;;  %s2157_s27 = sphi %s2207_s27, %s17_s27   ;;  %s2153_s26 = sphi %s2205_s26, %s2813_s26   ;;  %s2149_s25 = sphi %s2203_s25, %s2812_s25   ;;  %s2145_s24 = sphi %s2201_s24, %s2811_s24   ;;  %s2141_s23 = sphi %s2199_s23, %s2810_s23   ;;  %s2137_s22 = sphi %s2197_s22, %s2809_s22   ;;  %s2133_s21 = sphi %s2195_s21, %s2808_s21  }
   0x5   : > { %p27_p0 = scmp.ge.s32.totalorder %s26_s28, 3  ;;  %s1823_s30 = sadd.s32 4294967295, %s2157_s27  }
   0x6   : > { %p45_p1 = scmp.ne.s32.totalorder %s2137_s22, %s2133_s21  ;;  %p46_p2 = scmp.eq.s32.totalorder %s2157_s27, 0 }
   0x7   : > { %s2815_s28 = smov (%p27_p0, %s26_s28), 0  ;;  %s2817_s29 = smov (!%p27_p0, %s29_s29), %s2153_s26 }
   0x8   : > { %p31_p3 = scmp.ge.s32.totalorder %s2817_s29, 2  ;;  %p166_p4 = scmp.eq.s32.totalorder %s1823_s30, 5 }
   0x9   : > { %s33_s7 = ssub.s32 %s2149_s25, %s2815_s28  ;;  %p47_p5 = por %p46_p2, %p45_p1 }
   0xa   : > { %s2819_s29 = smov (%p31_p3, %s2817_s29), 0  ;;  %p2243_p6 = por %p166_p4, %p45_p1 }
   0xb   : > { %s34_s9 = ssub.s32 %s2153_s26, %s2819_s29  ;;  %s38_s11 = sadd.s32 1, %s2137_s22 }
   0xc   : > { %s35_s10 = sor.u32 %s34_s9, %s33_s7  ;;  %p1826_p8 = scmp.ge.s32.totalorder %s2157_s27, 6 }
   0xd   : > { %p36_p7 = scmp.eq.s32.totalorder %s35_s10, 0 }
   0xe   : > { %223 = sbr.rel (%p1826_p8) target bundleno = 32 (0x20), region = 28 }
   0xf   : > { %s2251_s12 = scalar_select %p36_p7, %s2137_s22, %s38_s11  }
  0x15   : > { %226 = sbr.rel (!%p47_p5) target bundleno = 32 (0x20), region = 32  ;;  %s228_s13 = sand.u32 (%p47_p5), 1, %s2137_s22  }
  0x16   : > { %s1829_s14 = sshll.u32 (%p47_p5), %s2153_s26, 1  ;;  %s1827_s15 = sshll.u32 (%p47_p5), %s228_s13, 6 }
  0x17   : > { %s1912_s16 = sshll.u32 (%p47_p5), %s2149_s25, 5  ;;  %s230_s7 = scalar_lea.vmem (%p47_p5), [#allocation3], %s1827_s15 }
  0x18   : > { %s234_s17 = sadd.s32 (%p47_p5), %s1912_s16, %s1829_s14 }
  0x19   : > { %s1831_s18 = sshll.u32 (%p47_p5), %s234_s17, 2 }
  0x1a   : > { %s236_s30 = scalar_lea.vmem (%p47_p5), %s2799_s0, %s1831_s18 }
  0x1b   : > { %v252_v0 = vld [vmem:[%s236_s30] sm:$0xff] (%p47_p5)   ;;  %v256_v1 = vld [vmem:[%s236_s30 + $0x10] sm:$0xff] (%p47_p5)  }
  0x1c   : > { %v260_v2 = vld [vmem:[%s236_s30 + $0x20] sm:$0xff]   ;;  %253 = vst [vmem:[%s230_s7] sm:$0xff] %v252_v0   ;;  %257 = vst [vmem:[%s230_s7 + $0x8] sm:$0xff] %v256_v1   ;;  %v264_v3 = vld [vmem:[%s236_s30 + $0x30] sm:$0xff]  }
  0x1d   : > { %261 = vst [vmem:[%s230_s7 + $0x10] sm:$0xff] %v260_v2   ;;  %v268_v4 = vld [vmem:[%s236_s30 + $0x40] sm:$0xff]   ;;  %v272_v5 = vld [vmem:[%s236_s30 + $0x50] sm:$0xff]   ;;  %265 = vst [vmem:[%s230_s7 + $0x18] sm:$0xff] %v264_v3  }
  0x1e   : > { %269 = vst [vmem:[%s230_s7 + $0x20] sm:$0xff] %v268_v4   ;;  %273 = vst [vmem:[%s230_s7 + $0x28] sm:$0xff] %v272_v5   ;;  %v276_v6 = vld [vmem:[%s236_s30 + $0x60] sm:$0xff]   ;;  %v280_v7 = vld [vmem:[%s236_s30 + $0x70] sm:$0xff]  }
  0x1f   : > { %277 = vst [vmem:[%s230_s7 + $0x30] sm:$0xff] %v276_v6   ;;  %281 = vst [vmem:[%s230_s7 + $0x38] sm:$0xff] %v280_v7  }
  0x20 PF: > { %p1832_p9 = scmp.ge.s32.totalorder %s2157_s27, 1  ;;  %p346_p10 = scmp.lt.s32.totalorder %s2157_s27, 7 }
  0x22   : > { %p347_p11 = pnand %p1832_p9, %p346_p10 }
  0x23   : > { %s353_s9 = sand.u32 (!%p347_p11), 1, %s2133_s21   ;;  %s2264_s10 = sshll.u32 (!%p347_p11), %s2145_s24, 1 }
  0x24   : > { %350 = sbr.rel (%p347_p11) target bundleno = 2258 (0x8d2), region = 77  ;;  %s1833_s11 = sshll.u32 (!%p347_p11), %s353_s9, 6 }
  0x25   : > { %s1834_s13 = sshll.u32 (!%p347_p11), %s353_s9, 7  ;;  %p394_p12 = scmp.lt.s32.totalorder (!%p347_p11), %s2264_s10, 3 }
  0x26   : > { %s2276_s21 = scalar_lea.vmem (!%p347_p11), [#allocation3], %s1833_s11  ;;  %s2278_s24 = scalar_lea.vmem (!%p347_p11), [#allocation4], %s1834_s13 }
  0x27   : > { %p1839_p13 = scmp.ne.s32.totalorder (!%p347_p11), %s2141_s23, 0 }
  0x2b   : > { %s395_s14 = scalar_select %p394_p12, %s2264_s10, 3 }
  0x2c   : > { %411 = sbr.rel (%p1839_p13) target bundleno = 51 (0x33), region = 85 }
  0x2d   : > { %s1836_s15 = sshll.u32 %s395_s14, 2  ;;  %s1838_s16 = sshll.u32 %s395_s14, 3 }
  0x2e   : > { %s397_s19 = scalar_lea.vmem %s2800_s1, %s1836_s15  ;;  %s2274_s7 = scalar_lea.vmem %s2805_s6, %s1838_s16 }
  0x2f   : > { %v2003_v8 = vld [vmem:[%s397_s19] sm:$0xff] (!%p1839_p13)  }
  0x30   : > { %420 = vst [vmem:[#allocation2] sm:$0xff] (!%p1839_p13), %v2003_v8 }
  0x33 PF: > { %v2284_v9 = vld [vmem:[%s2802_s3 + $0x4] ss:$8 sps:$4 sm:$0xff]   ;;  %v2289_v10 = vld [vmem:[%s2802_s3] ss:$8 sps:$4 sm:$0xff]   ;;  %v2159_v11 = vmov 0   ;;  %vm581_vm0 = vcmask 130048   ;;  %v629_v30 = vlaneseq }
  0x34   : > { %555 = vmatprep.mubr.bf16.mxu0 %v2159_v11  ;;  %707 = vmatprep.mubr.bf16.mxu1 %v2159_v11  ;;  %v2297_v12 = vld [vmem:[%s2802_s3 + $0x14] ss:$8 sps:$4 sm:$0xff]   ;;  %v2304_v13 = vld [vmem:[%s2802_s3 + $0x10] ss:$8 sps:$4 sm:$0xff]   ;;  %v2311_v14 = vld [vmem:[%s2802_s3 + $0x24] ss:$8 sps:$4 sm:$0xff]  }
  0x35   : > { %523 = vmatprep.subr.bf16.mxu0 %v2284_v9  ;;  %675 = vmatprep.subr.bf16.mxu1 %v2284_v9  ;;  %v2318_v15 = vld [vmem:[%s2802_s3 + $0x20] ss:$8 sps:$4 sm:$0xff]   ;;  %v2325_v16 = vld [vmem:[%s2802_s3 + $0x34] ss:$8 sps:$4 sm:$0xff]   ;;  %v2332_v17 = vld [vmem:[%s2802_s3 + $0x30] ss:$8 sps:$4 sm:$0xff]  }
  0x36   : > { %524 = vmatpush1.bf16.msra.mxu0 %v2289_v10  ;;  %676 = vmatpush1.bf16.msra.mxu1 %v2289_v10  ;;  %v2339_v18 = vld [vmem:[%s2802_s3 + $0x44] ss:$8 sps:$4 sm:$0xff]   ;;  %v2345_v19 = vld [vmem:[%s2802_s3 + $0x40] ss:$8 sps:$4 sm:$0xff]   ;;  %v2350_v20 = vld [vmem:[%s2802_s3 + $0x54] ss:$8 sps:$4 sm:$0xff]  }
  0x37   : > { %525 = vmatprep.subr.bf16.mxu0 %v2297_v12  ;;  %677 = vmatprep.subr.bf16.mxu1 %v2297_v12  ;;  %v2360_v21 = vld [vmem:[%s2802_s3 + $0x50] ss:$8 sps:$4 sm:$0xff]   ;;  %v2367_v22 = vld [vmem:[%s2802_s3 + $0x64] ss:$8 sps:$4 sm:$0xff]   ;;  %v2374_v23 = vld [vmem:[%s2802_s3 + $0x60] ss:$8 sps:$4 sm:$0xff]  }
  0x38   : > { %v2381_v24 = vld [vmem:[%s2802_s3 + $0x74] ss:$8 sps:$4 sm:$0xff]   ;;  %v2388_v25 = vld [vmem:[%s2802_s3 + $0x70] ss:$8 sps:$4 sm:$0xff]   ;;  %v2395_v26 = vld [vmem:[%s2801_s2 + $0x4] ss:$8 sps:$4 sm:$0xff]  }
  0x39   : > { %v440_v27 = vld [vmem:[#allocation2] sm:$0xff]  ;;  %v2031_v29 = vld [vmem:[%s2276_s21] sm:$0xff]   ;;  %v630_v31 = vshrl.u32 %v629_v30, 7  ;;  %s2430_s17 = sshll.u32 %s2141_s23, 3  ;;  %v2032_v48 = vld [vmem:[%s2276_s21 + $0x8] sm:$0xff]   ;;  %p1904_p9 = scmp.ne.s32.totalorder %s2141_s23, 2 }
  0x3a   : > { %526 = vmatpush1.bf16.msra.mxu0 %v2304_v13  ;;  %678 = vmatpush1.bf16.msra.mxu1 %v2304_v13  ;;  %v2402_v28 = vld [vmem:[%s2801_s2] ss:$8 sps:$4 sm:$0xff]   ;;  %p667_p0 = scmp.lt.s32.totalorder %s2430_s17, 20  ;;  %s797_s18 = sadd.s32 1, %s2430_s17  ;;  %v2033_v60 = vld [vmem:[%s2276_s21 + $0x10] sm:$0xff]  }
  0x3b   : > { %527 = vmatprep.subr.bf16.mxu0 %v2311_v14  ;;  %679 = vmatprep.subr.bf16.mxu1 %v2311_v14  ;;  %v635_v32 = vsub.s32 1, %v630_v31  ;;  %v439_v33 = vld [vmem:[%s2803_s4] sm:$0x3]  ;;  %v631_v34 = vsub.s32 0, %v630_v31  ;;  %p798_p1 = scmp.lt.s32.totalorder %s797_s18, 20  ;;  %s928_s20 = sadd.s32 2, %s2430_s17 }
  0x3c   : > { %s668_s16 = scalar_select %p667_p0, 1, 0  ;;  %v2034_v8 = vld [vmem:[%s2276_s21 + $0x18] sm:$0xff]  }
  0x3d   : > { %v2436_v35 = vrot.slane %v439_v33, %v635_v32  ;;  %v2438_v36 = vrot.slane %v439_v33, %v631_v34  ;;  %s799_s19 = scalar_select %p798_p1, 1, 0 }
  0x3e   : > { %528 = vmatpush1.bf16.msra.mxu0 %v2318_v15  ;;  %680 = vmatpush1.bf16.msra.mxu1 %v2318_v15  ;;  %v669_v39 = vstv %s668_s16  ;;  %p929_p2 = scmp.lt.s32.totalorder %s928_s20, 20  ;;  %s1059_s9 = sadd.s32 3, %s2430_s17 }
  0x3f   : > { %529 = vmatprep.subr.bf16.mxu0 %v2325_v16  ;;  %681 = vmatprep.subr.bf16.mxu1 %v2325_v16  ;;  %vm670_vm1 = vcmp.eq.s32.totalorder %v669_v39, 1  ;;  %v800_v51 = vstv %s799_s19  ;;  %p1060_p3 = scmp.lt.s32.totalorder %s1059_s9, 20  ;;  %s1190_s15 = sadd.s32 4, %s2430_s17 }
  0x40   : > { %vm801_vm2 = vcmp.eq.s32.totalorder %v800_v51, 1  ;;  %s930_s30 = scalar_select %p929_p2, 1, 0 }
  0x41   : > { %s1061_s14 = scalar_select %p1060_p3, 1, 0 }
  0x42   : > { %530 = vmatpush1.bf16.msra.mxu0 %v2332_v17  ;;  %682 = vmatpush1.bf16.msra.mxu1 %v2332_v17  ;;  %v931_v63 = vstv %s930_s30  ;;  %p1191_p4 = scmp.lt.s32.totalorder %s1190_s15, 20  ;;  %s1321_s13 = sadd.s32 5, %s2430_s17 }
  0x43   : > { %531 = vmatprep.subr.bf16.mxu0 %v2339_v18  ;;  %683 = vmatprep.subr.bf16.mxu1 %v2339_v18  ;;  %vm932_vm3 = vcmp.eq.s32.totalorder %v931_v63, 1  ;;  %v1062_v30 = vstv %s1061_s14  ;;  %p1322_p5 = scmp.lt.s32.totalorder %s1321_s13, 20  ;;  %s1452_s18 = sadd.s32 6, %s2430_s17 }
  0x44   : > { %vm1063_vm4 = vcmp.eq.s32.totalorder %v1062_v30, 1  ;;  %s1192_s11 = scalar_select %p1191_p4, 1, 0 }
  0x45   : > { %s1323_s16 = scalar_select %p1322_p5, 1, 0 }
  0x46   : > { %532 = vmatpush1.bf16.msra.mxu0 %v2345_v19  ;;  %684 = vmatpush1.bf16.msra.mxu1 %v2345_v19  ;;  %p1453_p7 = scmp.lt.s32.totalorder %s1452_s18, 20  ;;  %s1583_s20 = sadd.s32 7, %s2430_s17 }
  0x47   : > { %533 = vmatprep.subr.bf16.mxu0 %v2350_v20  ;;  %685 = vmatprep.subr.bf16.mxu1 %v2350_v20  ;;  %p2645_p8 = scmp.lt.s32.totalorder %s1583_s20, 20 }
  0x48   : > { %s1454_s19 = scalar_select %p1453_p7, 1, 0 }
  0x49   : > { %s1585_s17 = scalar_select %p2645_p8, 1, 0 }
  0x4a   : > { %534 = vmatpush1.bf16.msra.mxu0 %v2360_v21  ;;  %686 = vmatpush1.bf16.msra.mxu1 %v2360_v21 }
  0x4b   : > { %535 = vmatprep.subr.bf16.mxu0 %v2367_v22  ;;  %687 = vmatprep.subr.bf16.mxu1 %v2367_v22 }
  0x4e   : > { %536 = vmatpush1.bf16.msra.mxu0 %v2374_v23  ;;  %688 = vmatpush1.bf16.msra.mxu1 %v2374_v23 }
  0x4f   : > { %537 = vmatprep.subr.bf16.mxu0 %v2381_v24  ;;  %689 = vmatprep.subr.bf16.mxu1 %v2381_v24 }
  0x52   : > { %538 = vmatpush1.bf16.msra.mxu0 %v2388_v25  ;;  %690 = vmatpush1.bf16.msra.mxu1 %v2388_v25 }
  0x53   : > { %585 = vmatprep.subr.bf16.mxu0 %v2395_v26  ;;  %726 = vmatprep.subr.bf16.mxu1 %v2395_v26 }
  0x55   : > { %556 = vmatmul.mubr.bf16.vlgmr.msra.gmra.mrb[0].mxu0 %v440_v27 }
  0x56   : > { %586 = vmatpush1.bf16.msra.mxu0 %v2402_v28  ;;  %617 = vmatprep.mubr.bf16.mxu0 %v2159_v11 }
  0x57   : > { %806 = vmatprep.subr.bf16.mxu0 %v2284_v9 }
  0x61   : > { %1860 = vmatmul.mubr.msk.bf16.vlgmr.msra.gmra.mrb[0].mxu0 %vm581_vm0, %v2031_v29 }
  0x62   : > { %807 = vmatpush1.bf16.msra.mxu0 %v2289_v10  ;;  %838 = vmatprep.mubr.bf16.mxu0 %v2159_v11 }
  0x63   : > { %808 = vmatprep.subr.bf16.mxu0 %v2297_v12 }
  0x66   : > { %809 = vmatpush1.bf16.msra.mxu0 %v2304_v13 }
  0x67   : > { %810 = vmatprep.subr.bf16.mxu0 %v2311_v14 }
  0x6a   : > { %811 = vmatpush1.bf16.msra.mxu0 %v2318_v15 }
  0x6b   : > { %812 = vmatprep.subr.bf16.mxu0 %v2325_v16 }
  0x6e   : > { %813 = vmatpush1.bf16.msra.mxu0 %v2332_v17 }
  0x6f   : > { %814 = vmatprep.subr.bf16.mxu0 %v2339_v18 }
  0x72   : > { %815 = vmatpush1.bf16.msra.mxu0 %v2345_v19 }
  0x73   : > { %816 = vmatprep.subr.bf16.mxu0 %v2350_v20 }
  0x76   : > { %817 = vmatpush1.bf16.msra.mxu0 %v2360_v21 }
  0x77   : > { %818 = vmatprep.subr.bf16.mxu0 %v2367_v22 }
  0x7a   : > { %819 = vmatpush1.bf16.msra.mxu0 %v2374_v23 }
  0x7b   : > { %820 = vmatprep.subr.bf16.mxu0 %v2381_v24 }
  0x7e   : > { %821 = vmatpush1.bf16.msra.mxu0 %v2388_v25 }
  0x7f   : > { %857 = vmatprep.subr.bf16.mxu0 %v2395_v26 }
 0x134   : > { %v619_v37 = vpop.f32.mrb[0].mxu0 }
 0x135   : > { %v621_v38 = vpop.f32.mrb[1].mxu0  ;;  %v639_v42 = vadd.f32 %v2438_v36, %v619_v37 }
 0x136   : > { %v2441_v40 = vadd.f32 %v2436_v35, %v621_v38  ;;  %v623_v41 = vpop.f32.mrb[2].mxu0 }
 0x137   : > { %v641_v43 = vadd.f32 %v2438_v36, %v623_v41  ;;  %v625_v44 = vpop.f32.mrb[3].mxu0 }
 0x138   : > { %644 = vmax.xlane.f32.xlu0 %v2441_v40  ;;  %v2447_v46 = vadd.f32 %v2436_v35, %v625_v44 }
 0x139   : > { %v643_v45 = vpack.c.bf16 %v641_v43, %v639_v42  ;;  %v2035_v42 = vld [vmem:[%s2276_s21 + $0x20] sm:$0xff]  }
 0x13b   : > { %v671_v47 = vsel %vm670_vm1, %v643_v45, %v440_v27  ;;  %v1193_v45 = vstv %s1192_s11 }
 0x13c   : > { %708 = vmatmul.mubr.bf16.vlgmr.msra.gmra.mrb[0].mxu1 %v671_v47  ;;  %646 = vmax.xlane.f32.xlu0 %v2447_v46  ;;  %vm1194_vm5 = vcmp.eq.s32.totalorder %v1193_v45, 1 }
 0x13d   : > { %727 = vmatpush1.bf16.msra.mxu1 %v2402_v28  ;;  %758 = vmatprep.mubr.bf16.mxu1 %v2159_v11 }
 0x13e   : > { %937 = vmatprep.subr.bf16.mxu1 %v2284_v9 }
 0x148   : > { %1865 = vmatmul.mubr.msk.bf16.vlgmr.msra.gmra.mrb[0].mxu1 %vm581_vm0, %v2032_v48 }
 0x149   : > { %938 = vmatpush1.bf16.msra.mxu1 %v2289_v10  ;;  %969 = vmatprep.mubr.bf16.mxu1 %v2159_v11 }
 0x14a   : > { %939 = vmatprep.subr.bf16.mxu1 %v2297_v12 }
 0x14d   : > { %940 = vmatpush1.bf16.msra.mxu1 %v2304_v13 }
 0x14e   : > { %941 = vmatprep.subr.bf16.mxu1 %v2311_v14 }
 0x151   : > { %942 = vmatpush1.bf16.msra.mxu1 %v2318_v15 }
 0x152   : > { %943 = vmatprep.subr.bf16.mxu1 %v2325_v16 }
 0x155   : > { %944 = vmatpush1.bf16.msra.mxu1 %v2332_v17 }
 0x156   : > { %945 = vmatprep.subr.bf16.mxu1 %v2339_v18 }
 0x159   : > { %946 = vmatpush1.bf16.msra.mxu1 %v2345_v19 }
 0x15a   : > { %947 = vmatprep.subr.bf16.mxu1 %v2350_v20 }
 0x15d   : > { %948 = vmatpush1.bf16.msra.mxu1 %v2360_v21 }
 0x15e   : > { %949 = vmatprep.subr.bf16.mxu1 %v2367_v22 }
 0x161   : > { %950 = vmatpush1.bf16.msra.mxu1 %v2374_v23 }
 0x162   : > { %951 = vmatprep.subr.bf16.mxu1 %v2381_v24 }
 0x165   : > { %952 = vmatpush1.bf16.msra.mxu1 %v2388_v25 }
 0x166   : > { %988 = vmatprep.subr.bf16.mxu1 %v2395_v26 }
 0x21b   : > { %v760_v49 = vpop.f32.mrb[0].mxu1 }
 0x21c   : > { %v762_v50 = vpop.f32.mrb[1].mxu1  ;;  %v769_v54 = vadd.f32 %v760_v49, %v2438_v36 }
 0x21d   : > { %v2474_v52 = vadd.f32 %v762_v50, %v2436_v35  ;;  %v764_v53 = vpop.f32.mrb[2].mxu1 }
 0x21e   : > { %v771_v55 = vadd.f32 %v764_v53, %v2438_v36  ;;  %v766_v56 = vpop.f32.mrb[3].mxu1 }
 0x21f   : > { %774 = vmax.xlane.f32.xlu1 %v2474_v52  ;;  %v2480_v58 = vadd.f32 %v766_v56, %v2436_v35  ;;  %v2036_v56 = vld [vmem:[%s2276_s21 + $0x28] sm:$0xff]  }
 0x220   : > { %v773_v57 = vpack.c.bf16 %v771_v55, %v769_v54 }
 0x222   : > { %v802_v59 = vsel %vm801_vm2, %v773_v57, %v671_v47 }
 0x223   : > { %839 = vmatmul.mubr.bf16.vlgmr.msra.gmra.mrb[4].mxu0 %v802_v59  ;;  %776 = vmax.xlane.f32.xlu1 %v2480_v58 }
 0x224   : > { %858 = vmatpush1.bf16.msra.mxu0 %v2402_v28  ;;  %889 = vmatprep.mubr.bf16.mxu0 %v2159_v11 }
 0x225   : > { %1068 = vmatprep.subr.bf16.mxu0 %v2284_v9 }
 0x22f   : > { %1871 = vmatmul.mubr.msk.bf16.vlgmr.msra.gmra.mrb[4].mxu0 %vm581_vm0, %v2033_v60 }
 0x230   : > { %1069 = vmatpush1.bf16.msra.mxu0 %v2289_v10  ;;  %1100 = vmatprep.mubr.bf16.mxu0 %v2159_v11 }
 0x231   : > { %1070 = vmatprep.subr.bf16.mxu0 %v2297_v12 }
 0x234   : > { %1071 = vmatpush1.bf16.msra.mxu0 %v2304_v13 }
 0x235   : > { %1072 = vmatprep.subr.bf16.mxu0 %v2311_v14 }
 0x238   : > { %1073 = vmatpush1.bf16.msra.mxu0 %v2318_v15 }
 0x239   : > { %1074 = vmatprep.subr.bf16.mxu0 %v2325_v16 }
 0x23c   : > { %1075 = vmatpush1.bf16.msra.mxu0 %v2332_v17 }
 0x23d   : > { %1076 = vmatprep.subr.bf16.mxu0 %v2339_v18 }
 0x240   : > { %1077 = vmatpush1.bf16.msra.mxu0 %v2345_v19 }
 0x241   : > { %1078 = vmatprep.subr.bf16.mxu0 %v2350_v20 }
 0x244   : > { %1079 = vmatpush1.bf16.msra.mxu0 %v2360_v21 }
 0x245   : > { %1080 = vmatprep.subr.bf16.mxu0 %v2367_v22 }
 0x248   : > { %1081 = vmatpush1.bf16.msra.mxu0 %v2374_v23 }
 0x249   : > { %1082 = vmatprep.subr.bf16.mxu0 %v2381_v24 }
 0x24c   : > { %1083 = vmatpush1.bf16.msra.mxu0 %v2388_v25 }
 0x24d   : > { %1119 = vmatprep.subr.bf16.mxu0 %v2395_v26 }
 0x302   : > { %v891_v61 = vpop.f32.mrb[4].mxu0 }
 0x303   : > { %v893_v62 = vpop.f32.mrb[5].mxu0  ;;  %v900_v2 = vadd.f32 %v891_v61, %v2438_v36 }
 0x304   : > { %v2507_v0 = vadd.f32 %v893_v62, %v2436_v35  ;;  %v895_v1 = vpop.f32.mrb[6].mxu0 }
 0x305   : > { %v902_v3 = vadd.f32 %v895_v1, %v2438_v36  ;;  %v897_v4 = vpop.f32.mrb[7].mxu0  ;;  %v2038_v1 = vld [vmem:[%s2276_s21 + $0x38] sm:$0xff]  }
 0x306   : > { %v2512_v5 = vadd.f32 %v897_v4, %v2436_v35  ;;  %905 = vmax.xlane.f32.xlu0 %v2507_v0 }
 0x307   : > { %v904_v6 = vpack.c.bf16 %v902_v3, %v900_v2  ;;  %v645_v2 = vpop.xlane.xlu0 %644  ;;  %v775_v3 = vpop.xlane.xlu1 %774 }
 0x308   : > { %907 = vmax.xlane.f32.xlu1 %v2512_v5 }
 0x309   : > { %v933_v7 = vsel %vm932_vm3, %v904_v6, %v802_v59  ;;  %v2635_v6 = vsub.f32 %v2441_v40, %v645_v2 }
 0x30a   : > { %970 = vmatmul.mubr.bf16.vlgmr.msra.gmra.mrb[4].mxu1 %v933_v7 }
 0x30b   : > { %989 = vmatpush1.bf16.msra.mxu1 %v2402_v28  ;;  %1020 = vmatprep.mubr.bf16.mxu1 %v2159_v11  ;;  %v647_v4 = vpop.xlane.xlu0 %646 }
 0x30c   : > { %1199 = vmatprep.subr.bf16.mxu1 %v2284_v9 }
 0x316   : > { %1877 = vmatmul.mubr.msk.bf16.vlgmr.msra.gmra.mrb[4].mxu1 %vm581_vm0, %v2034_v8  ;;  %v777_v8 = vpop.xlane.xlu1 %776 }
 0x317   : > { %1200 = vmatpush1.bf16.msra.mxu1 %v2289_v10  ;;  %1231 = vmatprep.mubr.bf16.mxu1 %v2159_v11 }
 0x318   : > { %1201 = vmatprep.subr.bf16.mxu1 %v2297_v12 }
 0x31b   : > { %1202 = vmatpush1.bf16.msra.mxu1 %v2304_v13 }
 0x31c   : > { %1203 = vmatprep.subr.bf16.mxu1 %v2311_v14 }
 0x31f   : > { %1204 = vmatpush1.bf16.msra.mxu1 %v2318_v15 }
 0x320   : > { %1205 = vmatprep.subr.bf16.mxu1 %v2325_v16 }
 0x323   : > { %1206 = vmatpush1.bf16.msra.mxu1 %v2332_v17 }
 0x324   : > { %1207 = vmatprep.subr.bf16.mxu1 %v2339_v18 }
 0x327   : > { %1208 = vmatpush1.bf16.msra.mxu1 %v2345_v19 }
 0x328   : > { %1209 = vmatprep.subr.bf16.mxu1 %v2350_v20 }
 0x32b   : > { %1210 = vmatpush1.bf16.msra.mxu1 %v2360_v21 }
 0x32c   : > { %1211 = vmatprep.subr.bf16.mxu1 %v2367_v22 }
 0x32f   : > { %1212 = vmatpush1.bf16.msra.mxu1 %v2374_v23 }
 0x330   : > { %1213 = vmatprep.subr.bf16.mxu1 %v2381_v24 }
 0x333   : > { %1214 = vmatpush1.bf16.msra.mxu1 %v2388_v25 }
 0x334   : > { %1250 = vmatprep.subr.bf16.mxu1 %v2395_v26 }
 0x393   : > { %v906_v40 = vpop.xlane.xlu0 %905 }
 0x395   : > { %v908_v30 = vpop.xlane.xlu1 %907 }
 0x3e9   : > { %v1022_v27 = vpop.f32.mrb[4].mxu1 }
 0x3ea   : > { %v1024_v29 = vpop.f32.mrb[5].mxu1  ;;  %v1031_v33 = vadd.f32 %v1022_v27, %v2438_v36  ;;  %v650_v27 = vmul.f32 1.442695, %v2635_v6 }
 0x3eb   : > { %v2540_v31 = vadd.f32 %v1024_v29, %v2436_v35  ;;  %v1026_v32 = vpop.f32.mrb[6].mxu1 }
 0x3ec   : > { %v1033_v34 = vadd.f32 %v1026_v32, %v2438_v36  ;;  %v1028_v37 = vpop.f32.mrb[7].mxu1  ;;  %2039 = vpow2.f32 %v650_v27  ;;  %v2655_v32 = vsub.f32 %v2507_v0, %v906_v40  ;;  %v1586_v0 = vstv %s1585_s17 }
 0x3ed   : > { %v2545_v38 = vadd.f32 %v1028_v37, %v2436_v35  ;;  %1036 = vmax.xlane.f32.xlu0 %v2540_v31  ;;  %vm1587_vm8 = vcmp.eq.s32.totalorder %v1586_v0, 1 }
 0x3ee   : > { %v1035_v39 = vpack.c.bf16 %v1033_v34, %v1031_v33  ;;  %v2661_v34 = vsub.f32 %v2512_v5, %v908_v30 }
 0x3ef   : > { %1038 = vmax.xlane.f32.xlu1 %v2545_v38 }
 0x3f0   : > { %v1064_v41 = vsel %vm1063_vm4, %v1035_v39, %v933_v7  ;;  %v2639_v7 = vsub.f32 %v2447_v46, %v647_v4  ;;  %v911_v39 = vmul.f32 1.442695, %v2655_v32 }
 0x3f1   : > { %1101 = vmatmul.mubr.bf16.vlgmr.msra.gmra.mrb[8].mxu0 %v1064_v41 }
 0x3f2   : > { %1120 = vmatpush1.bf16.msra.mxu0 %v2402_v28  ;;  %1151 = vmatprep.mubr.bf16.mxu0 %v2159_v11  ;;  %v652_v29 = vmul.f32 1.442695, %v2639_v7 }
 0x3f3   : > { %1330 = vmatprep.subr.bf16.mxu0 %v2284_v9 }
 0x3f4   : > { %2041 = vpow2.f32 %v652_v29 }
 0x3fd   : > { %1883 = vmatmul.mubr.msk.bf16.vlgmr.msra.gmra.mrb[8].mxu0 %vm581_vm0, %v2035_v42 }
 0x3fe   : > { %1331 = vmatpush1.bf16.msra.mxu0 %v2289_v10  ;;  %1362 = vmatprep.mubr.bf16.mxu0 %v2159_v11 }
 0x3ff   : > { %1332 = vmatprep.subr.bf16.mxu0 %v2297_v12 }
 0x402   : > { %1333 = vmatpush1.bf16.msra.mxu0 %v2304_v13 }
 0x403   : > { %1334 = vmatprep.subr.bf16.mxu0 %v2311_v14 }
 0x406   : > { %1335 = vmatpush1.bf16.msra.mxu0 %v2318_v15 }
 0x407   : > { %1336 = vmatprep.subr.bf16.mxu0 %v2325_v16 }
 0x40a   : > { %1337 = vmatpush1.bf16.msra.mxu0 %v2332_v17 }
 0x40b   : > { %1338 = vmatprep.subr.bf16.mxu0 %v2339_v18 }
 0x40e   : > { %1339 = vmatpush1.bf16.msra.mxu0 %v2345_v19 }
 0x40f   : > { %1340 = vmatprep.subr.bf16.mxu0 %v2350_v20 }
 0x412   : > { %1341 = vmatpush1.bf16.msra.mxu0 %v2360_v21 }
 0x413   : > { %1342 = vmatprep.subr.bf16.mxu0 %v2367_v22 }
 0x416   : > { %1343 = vmatpush1.bf16.msra.mxu0 %v2374_v23 }
 0x417   : > { %1344 = vmatprep.subr.bf16.mxu0 %v2381_v24 }
 0x41a   : > { %1345 = vmatpush1.bf16.msra.mxu0 %v2388_v25 }
 0x41b   : > { %1381 = vmatprep.subr.bf16.mxu0 %v2395_v26 }
 0x47a   : > { %v1037_v33 = vpop.xlane.xlu0 %1036 }
 0x4d0   : > { %v1153_v43 = vpop.f32.mrb[8].mxu0 }
 0x4d1   : > { %v1155_v44 = vpop.f32.mrb[9].mxu0  ;;  %v1162_v49 = vadd.f32 %v1153_v43, %v2438_v36 }
 0x4d2   : > { %v2573_v47 = vadd.f32 %v1155_v44, %v2436_v35  ;;  %v1157_v48 = vpop.f32.mrb[10].mxu0 }
 0x4d3   : > { %v1164_v50 = vadd.f32 %v1157_v48, %v2438_v36  ;;  %v1159_v51 = vpop.f32.mrb[11].mxu0  ;;  %v913_v48 = vmul.f32 1.442695, %v2661_v34 }
 0x4d4   : > { %v2578_v53 = vadd.f32 %v1159_v51, %v2436_v35  ;;  %1167 = vmax.xlane.f32.xlu0 %v2573_v47 }
 0x4d5   : > { %v1166_v54 = vpack.c.bf16 %v1164_v50, %v1162_v49 }
 0x4d6   : > { %1169 = vmax.xlane.f32.xlu1 %v2578_v53 }
 0x4d7   : > { %v1195_v55 = vsel %vm1194_vm5, %v1166_v54, %v1064_v41  ;;  %v2665_v41 = vsub.f32 %v2540_v31, %v1037_v33 }
 0x4d8   : > { %1232 = vmatmul.mubr.bf16.vlgmr.msra.gmra.mrb[8].mxu1 %v1195_v55 }
 0x4d9   : > { %1251 = vmatpush1.bf16.msra.mxu1 %v2402_v28  ;;  %1282 = vmatprep.mubr.bf16.mxu1 %v2159_v11 }
 0x4da   : > { %1461 = vmatprep.subr.bf16.mxu1 %v2284_v9 }
 0x4e4   : > { %1889 = vmatmul.mubr.msk.bf16.vlgmr.msra.gmra.mrb[8].mxu1 %vm581_vm0, %v2036_v56 }
 0x4e5   : > { %1462 = vmatpush1.bf16.msra.mxu1 %v2289_v10  ;;  %1493 = vmatprep.mubr.bf16.mxu1 %v2159_v11 }
 0x4e6   : > { %1463 = vmatprep.subr.bf16.mxu1 %v2297_v12  ;;  %v1324_v12 = vstv %s1323_s16 }
 0x4e7   : > { %vm1325_vm6 = vcmp.eq.s32.totalorder %v1324_v12, 1 }
 0x4e9   : > { %1464 = vmatpush1.bf16.msra.mxu1 %v2304_v13 }
 0x4ea   : > { %1465 = vmatprep.subr.bf16.mxu1 %v2311_v14 }
 0x4ed   : > { %1466 = vmatpush1.bf16.msra.mxu1 %v2318_v15 }
 0x4ee   : > { %1467 = vmatprep.subr.bf16.mxu1 %v2325_v16 }
 0x4f1   : > { %1468 = vmatpush1.bf16.msra.mxu1 %v2332_v17 }
 0x4f2   : > { %1469 = vmatprep.subr.bf16.mxu1 %v2339_v18 }
 0x4f5   : > { %1470 = vmatpush1.bf16.msra.mxu1 %v2345_v19 }
 0x4f6   : > { %1471 = vmatprep.subr.bf16.mxu1 %v2350_v20 }
 0x4f9   : > { %1472 = vmatpush1.bf16.msra.mxu1 %v2360_v21  ;;  %v2037_v21 = vld [vmem:[%s2276_s21 + $0x30] sm:$0xff]  }
 0x4fa   : > { %1473 = vmatprep.subr.bf16.mxu1 %v2367_v22 }
 0x4fd   : > { %1474 = vmatpush1.bf16.msra.mxu1 %v2374_v23 }
 0x4fe   : > { %1475 = vmatprep.subr.bf16.mxu1 %v2381_v24  ;;  %v1455_v24 = vstv %s1454_s19 }
 0x4ff   : > { %vm1456_vm7 = vcmp.eq.s32.totalorder %v1455_v24, 1 }
 0x501   : > { %1476 = vmatpush1.bf16.msra.mxu1 %v2388_v25 }
 0x502   : > { %1512 = vmatprep.subr.bf16.mxu1 %v2395_v26 }
 0x561   : > { %v1168_v43 = vpop.xlane.xlu0 %1167 }
 0x562   : > { %v2682_v56 = vsub.f32 %v2573_v47, %v1168_v43 }
 0x564   : > { %v1173_v47 = vmul.f32 1.442695, %v2682_v56 }
 0x5b7   : > { %v1284_v9 = vpop.f32.mrb[8].mxu1 }
 0x5b8   : > { %v1286_v10 = vpop.f32.mrb[9].mxu1  ;;  %v1293_v15 = vadd.f32 %v1284_v9, %v2438_v36 }
 0x5b9   : > { %v2606_v13 = vadd.f32 %v1286_v10, %v2436_v35  ;;  %v1288_v14 = vpop.f32.mrb[10].mxu1  ;;  %v2040_v10 = vpop.eup %2039 }
 0x5ba   : > { %v1295_v16 = vadd.f32 %v1288_v14, %v2438_v36  ;;  %v1290_v17 = vpop.f32.mrb[11].mxu1 }
 0x5bb   : > { %v2611_v18 = vadd.f32 %v1290_v17, %v2436_v35  ;;  %1298 = vmax.xlane.f32.xlu0 %v2606_v13 }
 0x5bc   : > { %v1297_v19 = vpack.c.bf16 %v1295_v16, %v1293_v15  ;;  %v2042_v15 = vpop.eup %2041 }
 0x5bd   : > { %1300 = vmax.xlane.f32.xlu1 %v2611_v18 }
 0x5be   : > { %v1326_v20 = vsel %vm1325_vm6, %v1297_v19, %v1195_v55  ;;  %v1042_v55 = vmul.f32 1.442695, %v2665_v41 }
 0x5bf   : > { %1363 = vmatmul.mubr.bf16.vlgmr.msra.gmra.mrb[12].mxu0 %v1326_v20 }
 0x5c0   : > { %1382 = vmatpush1.bf16.msra.mxu0 %v2402_v28  ;;  %1413 = vmatprep.mubr.bf16.mxu0 %v2159_v11 }
 0x5cb   : > { %1895 = vmatmul.mubr.msk.bf16.vlgmr.msra.gmra.mrb[12].mxu0 %vm581_vm0, %v2037_v21 }
 0x648   : > { %v1299_v9 = vpop.xlane.xlu0 %1298 }
 0x649   : > { %v2694_v16 = vsub.f32 %v2606_v13, %v1299_v9 }
 0x69e   : > { %v1415_v22 = vpop.f32.mrb[12].mxu0 }
 0x69f   : > { %v1417_v23 = vpop.f32.mrb[13].mxu0  ;;  %v1424_v57 = vadd.f32 %v1415_v22, %v2438_v36 }
 0x6a0   : > { %v2621_v25 = vadd.f32 %v1417_v23, %v2436_v35  ;;  %v1419_v26 = vpop.f32.mrb[14].mxu0  ;;  %v1304_v23 = vmul.f32 1.442695, %v2694_v16 }
 0x6a1   : > { %v1426_v59 = vadd.f32 %v1419_v26, %v2438_v36  ;;  %v1421_v60 = vpop.f32.mrb[15].mxu0 }
 0x6a2   : > { %v2626_v61 = vadd.f32 %v1421_v60, %v2436_v35  ;;  %1429 = vmax.xlane.f32.xlu0 %v2621_v25 }
 0x6a3   : > { %v1428_v62 = vpack.c.bf16 %v1426_v59, %v1424_v57 }
 0x6a4   : > { %1431 = vmax.xlane.f32.xlu1 %v2626_v61 }
 0x6a5   : > { %v1457_v63 = vsel %vm1456_vm7, %v1428_v62, %v1326_v20 }
 0x6a6   : > { %1494 = vmatmul.mubr.bf16.vlgmr.msra.gmra.mrb[12].mxu1 %v1457_v63 }
 0x6a7   : > { %1513 = vmatpush1.bf16.msra.mxu1 %v2402_v28  ;;  %1544 = vmatprep.mubr.bf16.mxu1 %v2159_v11  ;;  %v2643_v28 = vsub.f32 %v2474_v52, %v775_v3  ;;  %v2650_v11 = vsub.f32 %v2480_v58, %v777_v8  ;;  %v1039_v58 = vpop.xlane.xlu1 %1038 }
 0x6a8   : > { %v2672_v5 = vsub.f32 %v2545_v38, %v1039_v58 }
 0x6a9   : > { %v780_v46 = vmul.f32 1.442695, %v2643_v28  ;;  %v782_v52 = vmul.f32 1.442695, %v2650_v11 }
 0x6ab   : > { %2043 = vpow2.f32 %v780_v46  ;;  %v1170_v31 = vpop.xlane.xlu1 %1169 }
 0x6ac   : > { %2045 = vpow2.f32 %v782_v52  ;;  %v2687_v12 = vsub.f32 %v2578_v53, %v1170_v31 }
 0x6ad   : > { %2047 = vpow2.f32 %v911_v39 }
 0x6ae   : > { %2049 = vpow2.f32 %v913_v48  ;;  %v1175_v53 = vmul.f32 1.442695, %v2687_v12 }
 0x6af   : > { %v1301_v14 = vpop.xlane.xlu1 %1300  ;;  %2051 = vpow2.f32 %v1042_v55 }
 0x6b0   : > { %v2698_v20 = vsub.f32 %v2611_v18, %v1301_v14 }
 0x6b2   : > { %1901 = vmatmul.mubr.msk.bf16.vlgmr.msra.gmra.mrb[12].mxu1 %vm581_vm0, %v2038_v1  ;;  %v1306_v26 = vmul.f32 1.442695, %v2698_v20 }
 0x6b5   : > { %v2044_v19 = vpop.eup %2043 }
 0x6b6   : > { %v2046_v21 = vpop.eup %2045 }
 0x6b7   : > { %v2048_v13 = vpop.eup %2047 }
 0x6b8   : > { %v2050_v18 = vpop.eup %2049 }
 0x6b9   : > { %v2052_v60 = vpop.eup %2051 }
 0x72f   : > { %v1430_v17 = vpop.xlane.xlu0 %1429 }
 0x730   : > { %v2702_v24 = vsub.f32 %v2621_v25, %v1430_v17 }
 0x731   : > { %v1432_v22 = vpop.xlane.xlu1 %1431 }
 0x732   : > { %v2706_v57 = vsub.f32 %v2626_v61, %v1432_v22  ;;  %v1435_v59 = vmul.f32 1.442695, %v2702_v24 }
 0x734   : > { %v1437_v62 = vmul.f32 1.442695, %v2706_v57 }
 0x785   : > { %v1546_v37 = vpop.f32.mrb[12].mxu1 }
 0x786   : > { %v1548_v42 = vpop.f32.mrb[13].mxu1  ;;  %v1555_v49 = vadd.f32 %v1546_v37, %v2438_v36 }
 0x787   : > { %v2668_v44 = vadd.f32 %v1548_v42, %v2436_v35  ;;  %v1550_v45 = vpop.f32.mrb[14].mxu1 }
 0x788   : > { %v1557_v50 = vadd.f32 %v1550_v45, %v2438_v36  ;;  %v1552_v51 = vpop.f32.mrb[15].mxu1  ;;  %v1044_v36 = vmul.f32 1.442695, %v2672_v5 }
 0x789   : > { %v2677_v54 = vadd.f32 %v1552_v51, %v2436_v35  ;;  %1560 = vmax.xlane.f32.xlu0 %v2668_v44 }
 0x78a   : > { %v1559_v38 = vpack.c.bf16 %v1557_v50, %v1555_v49  ;;  %2053 = vpow2.f32 %v1044_v36 }
 0x78b   : > { %1562 = vmax.xlane.f32.xlu1 %v2677_v54  ;;  %2055 = vpow2.f32 %v1173_v47 }
 0x78c   : > { %v2689_v35 = vsel %vm1587_vm8, %v1559_v38, %v1457_v63  ;;  %2057 = vpow2.f32 %v1175_v53 }
 0x78d   : > { %1589 = vst [vmem:[#allocation2] sm:$0xff] %v2689_v35  ;;  %654 = vadd.xlane.f32.xlu0 %v2040_v10  ;;  %2059 = vpow2.f32 %v1304_v23 }
 0x78e   : > { %2061 = vpow2.f32 %v1306_v26 }
 0x78f   : > { %656 = vadd.xlane.f32.xlu1 %v2042_v15  ;;  %2063 = vpow2.f32 %v1435_v59 }
 0x790   : > { %2065 = vpow2.f32 %v1437_v62 }
 0x791   : > { %784 = vadd.xlane.f32.xlu0 %v2044_v19 }
 0x793   : > { %786 = vadd.xlane.f32.xlu1 %v2046_v21 }
 0x794   : > { %v2054_v25 = vpop.eup %2053 }
 0x795   : > { %915 = vadd.xlane.f32.xlu0 %v2048_v13  ;;  %v2056_v63 = vpop.eup %2055 }
 0x796   : > { %v2058_v1 = vpop.eup %2057 }
 0x797   : > { %917 = vadd.xlane.f32.xlu1 %v2050_v18  ;;  %v2060_v61 = vpop.eup %2059 }
 0x798   : > { %v2062_v2 = vpop.eup %2061 }
 0x799   : > { %1046 = vadd.xlane.f32.xlu0 %v2052_v60  ;;  %v2064_v3 = vpop.eup %2063 }
 0x79a   : > { %v2066_v4 = vpop.eup %2065 }
 0x79b   : > { %1048 = vadd.xlane.f32.xlu1 %v2054_v25 }
 0x79d   : > { %1177 = vadd.xlane.f32.xlu0 %v2056_v63 }
 0x79f   : > { %1179 = vadd.xlane.f32.xlu1 %v2058_v1 }
 0x7a1   : > { %1308 = vadd.xlane.f32.xlu0 %v2060_v61 }
 0x7a3   : > { %1310 = vadd.xlane.f32.xlu1 %v2062_v2 }
 0x7a5   : > { %1439 = vadd.xlane.f32.xlu0 %v2064_v3 }
 0x7a7   : > { %1441 = vadd.xlane.f32.xlu1 %v2066_v4 }
 0x816   : > { %v1561_v8 = vpop.xlane.xlu0 %1560 }
 0x817   : > { %v2711_v27 = vsub.f32 %v2668_v44, %v1561_v8 }
 0x818   : > { %v1563_v40 = vpop.xlane.xlu1 %1562 }
 0x819   : > { %v1566_v29 = vmul.f32 1.442695, %v2711_v27  ;;  %v2715_v30 = vsub.f32 %v2677_v54, %v1563_v40 }
 0x81a   : > { %v655_v46 = vpop.xlane.xlu0 %654 }
 0x81b   : > { %2067 = vpow2.f32 %v1566_v29  ;;  %v1568_v52 = vmul.f32 1.442695, %v2715_v30 }
 0x81c   : > { %2069 = vlog2.f32 %v655_v46  ;;  %v657_v33 = vpop.xlane.xlu1 %656 }
 0x81d   : > { %2071 = vpow2.f32 %v1568_v52 }
 0x81e   : > { %2073 = vlog2.f32 %v657_v33  ;;  %v785_v58 = vpop.xlane.xlu0 %784 }
 0x81f   : > { %2075 = vlog2.f32 %v785_v58 }
 0x820   : > { %v787_v37 = vpop.xlane.xlu1 %786 }
 0x821   : > { %2077 = vlog2.f32 %v787_v37 }
 0x822   : > { %v916_v39 = vpop.xlane.xlu0 %915 }
 0x823   : > { %2079 = vlog2.f32 %v916_v39 }
 0x824   : > { %v918_v42 = vpop.xlane.xlu1 %917 }
 0x825   : > { %v2068_v0 = vpop.eup %2067  ;;  %2081 = vlog2.f32 %v918_v42 }
 0x826   : > { %v2070_v43 = vpop.eup %2069  ;;  %1570 = vadd.xlane.f32.xlu0 %v2068_v0  ;;  %v1047_v44 = vpop.xlane.xlu0 %1046 }
 0x827   : > { %v2072_v45 = vpop.eup %2071  ;;  %v659_v48 = vmul.f32 0.6931472, %v2070_v43  ;;  %2083 = vlog2.f32 %v1047_v44 }
 0x828   : > { %v2074_v49 = vpop.eup %2073  ;;  %1572 = vadd.xlane.f32.xlu1 %v2072_v45  ;;  %v1049_v50 = vpop.xlane.xlu1 %1048 }
 0x829   : > { %v2076_v51 = vpop.eup %2075  ;;  %v662_v31 = vsub.f32 %v2635_v6, %v659_v48  ;;  %v661_v54 = vmul.f32 0.6931472, %v2074_v49  ;;  %2085 = vlog2.f32 %v1049_v50 }
 0x82a   : > { %v789_v55 = vmul.f32 0.6931472, %v2076_v51  ;;  %v1178_v38 = vpop.xlane.xlu0 %1177 }
 0x82b   : > { %v2078_v9 = vpop.eup %2077  ;;  %664 = vst [vmem:[%s2278_s24] sm:$0xff] %v662_v31  ;;  %v663_v10 = vsub.f32 %v2639_v7, %v661_v54  ;;  %2087 = vlog2.f32 %v1178_v38 }
 0x82c   : > { %v792_v36 = vsub.f32 %v2643_v28, %v789_v55  ;;  %v791_v14 = vmul.f32 0.6931472, %v2078_v9  ;;  %v1180_v15 = vpop.xlane.xlu1 %1179 }
 0x82d   : > { %v2080_v47 = vpop.eup %2079  ;;  %665 = vst [vmem:[%s2278_s24 + $0x8] sm:$0xff] %v663_v10  ;;  %2089 = vlog2.f32 %v1180_v15 }
 0x82e   : > { %1866 = vst [vmem:[%s2278_s24 + $0x10] sm:$0xff] %v792_v36  ;;  %v793_v6 = vsub.f32 %v2650_v11, %v791_v14  ;;  %v920_v17 = vmul.f32 0.6931472, %v2080_v47  ;;  %v1309_v19 = vpop.xlane.xlu0 %1308 }
 0x82f   : > { %v2082_v53 = vpop.eup %2081  ;;  %2091 = vlog2.f32 %v1309_v19 }
 0x830   : > { %1867 = vst [vmem:[%s2278_s24 + $0x18] sm:$0xff] %v793_v6  ;;  %v923_v7 = vsub.f32 %v2655_v32, %v920_v17  ;;  %v922_v21 = vmul.f32 0.6931472, %v2082_v53  ;;  %v1311_v28 = vpop.xlane.xlu1 %1310 }
 0x831   : > { %v2084_v22 = vpop.eup %2083  ;;  %2093 = vlog2.f32 %v1311_v28 }
 0x832   : > { %1872 = vst [vmem:[%s2278_s24 + $0x20] sm:$0xff] %v923_v7  ;;  %v924_v23 = vsub.f32 %v2661_v34, %v922_v21  ;;  %v1051_v13 = vmul.f32 0.6931472, %v2084_v22  ;;  %v1440_v26 = vpop.xlane.xlu0 %1439 }
 0x833   : > { %v2086_v11 = vpop.eup %2085  ;;  %2095 = vlog2.f32 %v1440_v26 }
 0x834   : > { %1873 = vst [vmem:[%s2278_s24 + $0x28] sm:$0xff] %v924_v23  ;;  %v1054_v18 = vsub.f32 %v2665_v41, %v1051_v13  ;;  %v1053_v59 = vmul.f32 0.6931472, %v2086_v11  ;;  %v1442_v32 = vpop.xlane.xlu1 %1441 }
 0x835   : > { %v2088_v60 = vpop.eup %2087  ;;  %2097 = vlog2.f32 %v1442_v32 }
 0x836   : > { %1878 = vst [vmem:[%s2278_s24 + $0x30] sm:$0xff] %v1054_v18  ;;  %v1055_v62 = vsub.f32 %v2672_v5, %v1053_v59  ;;  %v1182_v25 = vmul.f32 0.6931472, %v2088_v60 }
 0x837   : > { %v2090_v63 = vpop.eup %2089 }
 0x838   : > { %1879 = vst [vmem:[%s2278_s24 + $0x38] sm:$0xff] %v1055_v62  ;;  %v1185_v34 = vsub.f32 %v2682_v56, %v1182_v25  ;;  %v1184_v1 = vmul.f32 0.6931472, %v2090_v63 }
 0x839   : > { %v2092_v61 = vpop.eup %2091 }
 0x83a   : > { %1884 = vst [vmem:[%s2278_s24 + $0x40] sm:$0xff] %v1185_v34  ;;  %v1186_v41 = vsub.f32 %v2687_v12, %v1184_v1  ;;  %v1313_v2 = vmul.f32 0.6931472, %v2092_v61 }
 0x83b   : > { %v2094_v3 = vpop.eup %2093 }
 0x83c   : > { %1885 = vst [vmem:[%s2278_s24 + $0x48] sm:$0xff] %v1186_v41  ;;  %v1316_v4 = vsub.f32 %v2694_v16, %v1313_v2  ;;  %v1315_v8 = vmul.f32 0.6931472, %v2094_v3 }
 0x83d   : > { %v2096_v5 = vpop.eup %2095 }
 0x83e   : > { %1890 = vst [vmem:[%s2278_s24 + $0x50] sm:$0xff] %v1316_v4  ;;  %v1317_v40 = vsub.f32 %v2698_v20, %v1315_v8  ;;  %v1444_v29 = vmul.f32 0.6931472, %v2096_v5 }
 0x83f   : > { %v2098_v46 = vpop.eup %2097 }
 0x840   : > { %1891 = vst [vmem:[%s2278_s24 + $0x58] sm:$0xff] %v1317_v40  ;;  %v1447_v56 = vsub.f32 %v2702_v24, %v1444_v29  ;;  %v1446_v52 = vmul.f32 0.6931472, %v2098_v46  ;;  %v1594_v24 = vunpack.c.l.bf16 (!%p1904_p9), %v2689_v35 }
 0x842   : > { %1896 = vst [vmem:[%s2278_s24 + $0x60] sm:$0xff] %v1447_v56  ;;  %v1448_v12 = vsub.f32 %v2706_v57, %v1446_v52  ;;  %v1595_v57 = vunpack.c.h.bf16 (!%p1904_p9), %v2689_v35  ;;  %1596 = vst [vmem:[%s2274_s7] sm:$0xff] (!%p1904_p9), %v1594_v24 }
 0x844   : > { %1897 = vst [vmem:[%s2278_s24 + $0x68] sm:$0xff] %v1448_v12  ;;  %1597 = vst [vmem:[%s2274_s7 + $0x8] sm:$0xff] (!%p1904_p9), %v1595_v57 }
 0x8b3   : > { %v1571_v33 = vpop.xlane.xlu0 %1570 }
 0x8b4   : > { %2099 = vlog2.f32 %v1571_v33 }
 0x8b5   : > { %v1573_v16 = vpop.xlane.xlu1 %1572 }
 0x8b6   : > { %2101 = vlog2.f32 %v1573_v16 }
 0x8be   : > { %v2100_v58 = vpop.eup %2099 }
 0x8bf   : > { %v1575_v37 = vmul.f32 0.6931472, %v2100_v58  ;;  %1593 = sbr.rel (%p1904_p9) target bundleno = 2246 (0x8c6), region = 89 }
 0x8c0   : > { %v2102_v39 = vpop.eup %2101 }
 0x8c1   : > { %v1578_v20 = vsub.f32 %v2711_v27, %v1575_v37  ;;  %v1577_v42 = vmul.f32 0.6931472, %v2102_v39 }
 0x8c3   : > { %1902 = vst [vmem:[%s2278_s24 + $0x70] sm:$0xff] %v1578_v20  ;;  %v1579_v0 = vsub.f32 %v2715_v30, %v1577_v42 }
 0x8c5   : > { %1903 = vst [vmem:[%s2278_s24 + $0x78] sm:$0xff] %v1579_v0 }
 0x8c6 PF: > { %1609 = sbr.rel (!%p2243_p6) target bundleno = 2258 (0x8d2), region = 93  ;;  %s1913_s30 = sshll.u32 (%p2243_p6), %s2141_s23, 5  ;;  %v1673_v35 = vld [vmem:[%s2278_s24] sm:$0xff] (%p2243_p6)  ;;  %v1675_v27 = vld [vmem:[%s2278_s24 + $0x8] sm:$0xff] (%p2243_p6)  ;;  %v1677_v30 = vld [vmem:[%s2278_s24 + $0x10] sm:$0xff] (%p2243_p6) }
 0x8c7   : > { %s1613_s8 = sadd.s32 (%p2243_p6), %s1913_s30, %s2264_s10  ;;  %v1679_v43 = vld [vmem:[%s2278_s24 + $0x18] sm:$0xff] (%p2243_p6)  ;;  %v1681_v44 = vld [vmem:[%s2278_s24 + $0x20] sm:$0xff] (%p2243_p6)  ;;  %v1683_v45 = vld [vmem:[%s2278_s24 + $0x28] sm:$0xff] (%p2243_p6) }
 0x8c8   : > { %s1909_s7 = sshll.u32 (%p2243_p6), %s1613_s8, 3  ;;  %v1685_v48 = vld [vmem:[%s2278_s24 + $0x30] sm:$0xff] (%p2243_p6)  ;;  %v1687_v49 = vld [vmem:[%s2278_s24 + $0x38] sm:$0xff] (%p2243_p6)  ;;  %v1689_v50 = vld [vmem:[%s2278_s24 + $0x40] sm:$0xff] (%p2243_p6) }
 0x8c9   : > { %s1615_s15 = scalar_lea.vmem (%p2243_p6), %s2804_s5, %s1909_s7  ;;  %v1691_v51 = vld [vmem:[%s2278_s24 + $0x48] sm:$0xff] (%p2243_p6)  ;;  %v1693_v31 = vld [vmem:[%s2278_s24 + $0x50] sm:$0xff] (%p2243_p6)  ;;  %v1695_v54 = vld [vmem:[%s2278_s24 + $0x58] sm:$0xff] (%p2243_p6) }
 0x8ca   : > { %1674 = vst [vmem:[%s1615_s15] sm:$0xff] (%p2243_p6), %v1673_v35  ;;  %1676 = vst [vmem:[%s1615_s15 + $0x8] sm:$0xff] (%p2243_p6), %v1675_v27  ;;  %v1697_v55 = vld [vmem:[%s2278_s24 + $0x60] sm:$0xff] (%p2243_p6)  ;;  %v1699_v38 = vld [vmem:[%s2278_s24 + $0x68] sm:$0xff] (%p2243_p6) }
 0x8cb   : > { %1678 = vst [vmem:[%s1615_s15 + $0x20] sm:$0xff] (%p2243_p6), %v1677_v30  ;;  %1680 = vst [vmem:[%s1615_s15 + $0x28] sm:$0xff] (%p2243_p6), %v1679_v43  ;;  %v1701_v9 = vld [vmem:[%s2278_s24 + $0x70] sm:$0xff] (%p2243_p6) }
 0x8cc   : > { %1682 = vst [vmem:[%s1615_s15 + $0x40] sm:$0xff] (%p2243_p6), %v1681_v44  ;;  %1684 = vst [vmem:[%s1615_s15 + $0x48] sm:$0xff] (%p2243_p6), %v1683_v45  ;;  %v1703_v10 = vld [vmem:[%s2278_s24 + $0x78] sm:$0xff] (%p2243_p6) }
 0x8cd   : > { %1686 = vst [vmem:[%s1615_s15 + $0x60] sm:$0xff] %v1685_v48  ;;  %1688 = vst [vmem:[%s1615_s15 + $0x68] sm:$0xff] %v1687_v49 }
 0x8ce   : > { %1690 = vst [vmem:[%s1615_s15 + $0x80] sm:$0xff] %v1689_v50  ;;  %1692 = vst [vmem:[%s1615_s15 + $0x88] sm:$0xff] %v1691_v51 }
 0x8cf   : > { %1694 = vst [vmem:[%s1615_s15 + $0xa0] sm:$0xff] %v1693_v31  ;;  %1696 = vst [vmem:[%s1615_s15 + $0xa8] sm:$0xff] %v1695_v54 }
 0x8d0   : > { %1698 = vst [vmem:[%s1615_s15 + $0xc0] sm:$0xff] %v1697_v55  ;;  %1700 = vst [vmem:[%s1615_s15 + $0xc8] sm:$0xff] %v1699_v38 }
 0x8d1   : > { %1702 = vst [vmem:[%s1615_s15 + $0xe0] sm:$0xff] %v1701_v9  ;;  %1704 = vst [vmem:[%s1615_s15 + $0xe8] sm:$0xff] %v1703_v10 }
 0x8d2 PF: > { %s17_s27 = sadd.s32 1, %s2157_s27   ;;  %s2808_s21 = smov %s2137_s22 }
 0x8d3   : > { %p14_p6 = scmp.ge.s32.totalorder %s17_s27, 8   ;;  %s2809_s22 = smov %s2251_s12 }
 0x8d4   : > { %s2810_s23 = smov %s2149_s25  ;;  %s2811_s24 = smov %s2153_s26 }
 0x8d5   : > { %s2812_s25 = smov %s2815_s28  ;;  %s2813_s26 = smov %s2819_s29 }
 0x8d6   :  { %16 = sbr.rel (!%p14_p6) target bundleno = 4 (0x4), region = 191 }

</bundles_post_ra>
